<compile_context>
chip_gen: v7x
topology: tpu7x:2x2x1
jax: 0.10.0
libtpu: 0.0.40
codegen_flags: <defaults>
</compile_context>

<pallas_src>
import functools

import jax
import jax.numpy as jnp
from jax import lax
from jax.experimental import pallas as pl
from jax.experimental.pallas import tpu as pltpu


def _round_up(x, m):
    return ((x + m - 1) // m) * m


def _pick_time_block(T, Bb, Hp, max_tb=64):
    """VMEM-budgeted time block + per-generation scoped-VMEM limit."""
    try:
        kind = jax.devices()[0].device_kind.lower()
    except Exception:  # pragma: no cover - defensive
        kind = ""
    # v7x: 64 MiB physical VMEM per TensorCore; v5e/v6e: 128 MiB.
    vmem_limit = (32 << 20) if "v7" in kind else (64 << 20)
    fixed = 2 * (Hp * 3 * Hp * 2)        # double-buffered bf16 W_hh^T
    fixed += Bb * Hp * 4                 # carried-h VMEM scratch
    fixed += 2 * Hp * 4 + (1 << 16)      # b_hh_n buffers + slack
    budget = int(0.75 * vmem_limit) - fixed
    per_step = 2 * (Bb * 3 * Hp * 2) + 2 * (Bb * Hp * 4)   # 2x gi(bf16) + 2x out(f32)
    tb = max(1, min(max_tb, budget // per_step, T))
    if tb >= 8:
        tb = (tb // 8) * 8
    return int(tb), vmem_limit


def gru_recurrence_kernel(gi_ref, whh_ref, bhn_ref, out_ref, h_scratch,
                          *, tb, hp, unroll):
    """Tb GRU time steps per grid iteration (PyTorch gate order r, z, n).

    gi_ref   : (Tb, Bb, 3*Hp) bf16  precomputed input gates, time-major, gates
                                    on lanes; r/z include b_ih + b_hh, n only b_ih_n.
    whh_ref  : (Hp, 3*Hp)     bf16  fused per-gate W_hh^T (x @ W^T convention).
    bhn_ref  : (1, Hp)        f32   b_hh_n (added before the r* multiplication).
    out_ref  : (Tb, Bb, Hp)   f32   hidden states, time-major (dense stores).
    h_scratch: (Bb, Hp)       f32   hidden state carried across time grid steps.
    """
    @pl.when(pl.program_id(1) == 0)   # start of the time axis for this batch block
    def _():
        h_scratch[...] = jnp.zeros_like(h_scratch)

    w_all = whh_ref[...]                                   # resident (Hp, 3Hp) bf16
    bb = h_scratch.shape[0]
    # Hoisted out of the (partially) unrolled loop: JAX does not CSE broadcasts.
    b_hn = jnp.broadcast_to(bhn_ref[...], (bb, hp))

    def step(s, h_prev):
        h_b = h_prev.astype(w_all.dtype)                   # bf16 for the MXU
        gh = jnp.dot(h_b, w_all, preferred_element_type=jnp.float32)   # (Bb, 3Hp)
        gi_s = gi_ref[s].astype(jnp.float32)               # (Bb, 3Hp)
        r = jax.nn.sigmoid(gi_s[:, :hp] + gh[:, :hp])
        z = jax.nn.sigmoid(gi_s[:, hp:2 * hp] + gh[:, hp:2 * hp])
        n = jnp.tanh(gi_s[:, 2 * hp:] + r * (gh[:, 2 * hp:] + b_hn))
        h_new = (1.0 - z) * n + z * h_prev
        out_ref[s] = h_new                                 # dense (Bb, Hp) store
        return h_new

    h_final = lax.fori_loop(0, tb, step, h_scratch[...], unroll=unroll)
    h_scratch[...] = h_final


def gru_forward_pallas(x_cat, w_ih, w_hh, b_ih, b_hh):
    """x_cat: (B, T, E) f32; PyTorch-layout GRU params. Returns (out, hidden)."""
    B, T, E = x_cat.shape
    H = w_hh.shape[1]                  # static from shape
    Hp = _round_up(max(H, 128), 128)   # lane-pad hidden dim
    Bp = _round_up(max(B, 8), 8)       # sublane-pad batch

    # Batch blocking: 2 blocks when cleanly splittable -> "parallel" grid axis
    # (lets v7x's two TensorCores split the batch; a single block elsewhere).
    nb = 2 if (Bp % 16 == 0) else 1
    Bb = Bp // nb

    Tb, vmem_limit = _pick_time_block(T, Bb, Hp)
    Tp = _round_up(T, Tb)              # pad time instead of shrinking Tb

    f32, bf16 = jnp.float32, jnp.bfloat16

    # Per-gate split (r, z, n) and zero-pad H -> Hp.
    w_ih3 = jnp.pad(w_ih.reshape(3, H, E).astype(f32), ((0, 0), (0, Hp - H), (0, 0)))
    w_hh3 = jnp.pad(w_hh.reshape(3, H, H).astype(f32), ((0, 0), (0, Hp - H), (0, Hp - H)))
    b_ih3 = jnp.pad(b_ih.reshape(3, H).astype(f32), ((0, 0), (0, Hp - H)))
    b_hh3 = jnp.pad(b_hh.reshape(3, H).astype(f32), ((0, 0), (0, Hp - H)))

    # Fused recurrent weight: gates concatenated on the lane axis, x @ W^T form.
    w_all = jnp.concatenate([w_hh3[0].T, w_hh3[1].T, w_hh3[2].T], axis=1).astype(bf16)  # (Hp, 3Hp)

    # Hoisted input projection, time-major, gates on lanes.
    w_ih_cat = jnp.concatenate([w_ih3[0].T, w_ih3[1].T, w_ih3[2].T], axis=1)            # (E, 3Hp)
    gate_bias = jnp.concatenate(
        [b_ih3[0] + b_hh3[0], b_ih3[1] + b_hh3[1], b_ih3[2]], axis=0)                   # (3Hp,)

    x_pad = jnp.pad(x_cat.astype(f32), ((0, Bp - B), (0, 0), (0, 0)))                   # pad batch first
    gi = jnp.einsum("bte,ef->tbf", x_pad, w_ih_cat) + gate_bias                         # (T, Bp, 3Hp)
    gi = jnp.pad(gi, ((0, Tp - T), (0, 0), (0, 0))).astype(bf16)                        # time pad + bf16

    bhn = b_hh3[2].reshape(1, Hp)

    kernel = functools.partial(gru_recurrence_kernel, tb=Tb, hp=Hp,
                               unroll=max(1, min(Tb, 8)))

    # NOTE: W_all / b_hh_n have constant index_maps so they are fetched once;
    # their (small) second pipeline buffer is already accounted for in the
    # VMEM budget above.
    out_padded = pl.pallas_call(
        kernel,
        out_shape=jax.ShapeDtypeStruct((Tp, Bp, Hp), f32),
        grid_spec=pltpu.PrefetchScalarGridSpec(
            num_scalar_prefetch=0,
            grid=(nb, Tp // Tb),
            in_specs=[
                pl.BlockSpec((Tb, Bb, 3 * Hp), lambda b, t: (t, b, 0)),   # Gi (bf16)
                pl.BlockSpec((Hp, 3 * Hp), lambda b, t: (0, 0)),          # W_hh^T fused
                pl.BlockSpec((1, Hp), lambda b, t: (0, 0)),               # b_hh_n
            ],
            out_specs=pl.BlockSpec((Tb, Bb, Hp), lambda b, t: (t, b, 0)),
            scratch_shapes=[pltpu.VMEM((Bb, Hp), f32)],                   # carried h
        ),
        compiler_params=pltpu.CompilerParams(
            dimension_semantics=("parallel", "arbitrary"),  # batch parallel, time serial
            vmem_limit_bytes=vmem_limit,
        ),
    )(gi, w_all, bhn)

    out = jnp.transpose(out_padded[:T, :B, :H], (1, 0, 2))   # (B, T, H), batch_first
    hidden = out[:, -1, :][None]                             # (n_layers=1, B, H)
    return out, hidden


def encoder_rnn_forward(seq, params):
    """Mirror of EncoderRNN.forward(seq, hidden=None)."""
    x = jnp.take(params["emb1_weight"], seq, axis=0)   # (B, T, 300)
    y = jnp.take(params["emb2_weight"], seq, axis=0)   # (B, T, emb_dim)
    x_cat = jnp.concatenate([x, y], axis=2)            # (B, T, emb_dim + 300)
    return gru_forward_pallas(
        x_cat,
        params["gru_w_ih"], params["gru_w_hh"],
        params["gru_b_ih"], params["gru_b_hh"],
    )


def encoder_rnn_reference(seq, params):
    """Pure-JAX f32 reference (PyTorch GRU semantics) for validation."""
    x = jnp.take(params["emb1_weight"], seq, axis=0)
    y = jnp.take(params["emb2_weight"], seq, axis=0)
    x_cat = jnp.concatenate([x, y], axis=2)
    w_ih, w_hh = params["gru_w_ih"], params["gru_w_hh"]
    b_ih, b_hh = params["gru_b_ih"], params["gru_b_hh"]
    B, T, _ = x_cat.shape
    H = w_hh.shape[1]

    def step(h, x_t):
        gi = x_t @ w_ih.T + b_ih
        gh = h @ w_hh.T + b_hh
        i_r, i_z, i_n = gi[:, :H], gi[:, H:2 * H], gi[:, 2 * H:]
        h_r, h_z, h_n = gh[:, :H], gh[:, H:2 * H], gh[:, 2 * H:]
        r = jax.nn.sigmoid(i_r + h_r)
        z = jax.nn.sigmoid(i_z + h_z)
        n = jnp.tanh(i_n + r * h_n)
        h_new = (1.0 - z) * n + z * h
        return h_new, h_new

    h0 = jnp.zeros((B, H), jnp.float32)
    _, outs = lax.scan(step, h0, jnp.swapaxes(x_cat, 0, 1))
    out = jnp.swapaxes(outs, 0, 1)
    return out, out[:, -1, :][None]


def init_params(key, hidden_dim, emb_dim, vocab_size):
    """Deterministic synthetic weights (shapes follow the PyTorch module)."""
    k1, k2, k3, k4, k5, k6 = jax.random.split(key, 6)
    input_size = emb_dim + 300
    bound = 1.0 / jnp.sqrt(hidden_dim)
    return {
        "emb1_weight": jax.random.normal(k1, (vocab_size, 300), jnp.float32) * 0.1,
        "emb2_weight": jax.random.normal(k2, (vocab_size, emb_dim), jnp.float32) * 0.1,
        # PyTorch GRU params: weight_ih_l0 (3H, input), weight_hh_l0 (3H, H),
        # bias_ih_l0 (3H,), bias_hh_l0 (3H,), gate order (r, z, n).
        "gru_w_ih": jax.random.uniform(k3, (3 * hidden_dim, input_size),
                                       jnp.float32, -bound, bound),
        "gru_w_hh": jax.random.uniform(k4, (3 * hidden_dim, hidden_dim),
                                       jnp.float32, -bound, bound),
        "gru_b_ih": jax.random.uniform(k5, (3 * hidden_dim,), jnp.float32, -bound, bound),
        "gru_b_hh": jax.random.uniform(k6, (3 * hidden_dim,), jnp.float32, -bound, bound),
    }


if __name__ == "__main__":
    key = jax.random.PRNGKey(0)
    B, T = 2, 8
    hidden_dim, emb_dim, vocab_size = 32, 16, 50

    kp, ks = jax.random.split(key)
    params = init_params(kp, hidden_dim, emb_dim, vocab_size)
    seq = jax.random.randint(ks, (B, T), 0, vocab_size, dtype=jnp.int32)

    out, hidden = jax.jit(encoder_rnn_forward)(seq, params)
    jax.block_until_ready((out, hidden))

    assert out.shape == (B, T, hidden_dim), out.shape
    assert hidden.shape == (1, B, hidden_dim), hidden.shape
    assert bool(jnp.all(jnp.isfinite(out))) and bool(jnp.all(jnp.isfinite(hidden)))

    # Numerical check vs pure-JAX f32 reference (loose tol: bf16 recurrent matmul / bf16 gi).
    ref_out, ref_hidden = encoder_rnn_reference(seq, params)
    assert jnp.allclose(out, ref_out, atol=2e-2, rtol=2e-2), \
        float(jnp.max(jnp.abs(out - ref_out)))
    assert jnp.allclose(hidden, ref_hidden, atol=2e-2, rtol=2e-2)

    print("KERNEL_OK")
</pallas_src>

<mosaic_0001>
module attributes {stable_mosaic.version = 11 : i64} {
  func.func @gru_recurrence_kernel(%arg0: i32, %arg1: i32, %arg2: memref<8x8x384xbf16, #tpu.memory_space<vmem>>, %arg3: memref<128x384xbf16, #tpu.memory_space<vmem>>, %arg4: memref<1x128xf32, #tpu.memory_space<vmem>>, %arg5: memref<8x8x128xf32, #tpu.memory_space<vmem>>, %arg6: memref<8x128xf32, #tpu.memory_space<vmem>>) attributes {dimension_semantics = [#tpu.dimension_semantics<parallel>, #tpu.dimension_semantics<arbitrary>], iteration_bounds = array<i64: 1, 1>, scalar_prefetch = 0 : i64, scratch_operands = 1 : i64, tpu.core_type = #tpu.core_type<tc>, window_params = [{transform_indices = @transform_0, window_bounds = array<i64: 8, 8, 384>}, {pipeline_mode = #tpu.pipeline_mode<synchronous>, transform_indices = @transform_1, window_bounds = array<i64: 128, 384>}, {pipeline_mode = #tpu.pipeline_mode<synchronous>, transform_indices = @transform_2, window_bounds = array<i64: 1, 128>}, {transform_indices = @transform_3, window_bounds = array<i64: 8, 8, 128>}]} {
    %c0_i32 = arith.constant 0 : i32
    %0 = arith.cmpi eq, %arg1, %c0_i32 : i32
    %1 = arith.extui %0 : i1 to i32
    %c0_i32_0 = arith.constant 0 : i32
    %2 = arith.cmpi ne, %1, %c0_i32_0 : i32
    scf.if %2 {
      %cst_72 = arith.constant 0.000000e+00 : f32
      %305 = vector.broadcast %cst_72 : f32 to vector<8x128xf32>
      %c0_73 = arith.constant 0 : index
      %c0_74 = arith.constant 0 : index
      %306 = vector.load %arg6[%c0_73, %c0_74] : memref<8x128xf32, #tpu.memory_space<vmem>>, vector<8x128xf32>
      tpu.vector_store %arg6[%c0_73, %c0_74], %305 {strides = array<i32>} : memref<8x128xf32, #tpu.memory_space<vmem>>, vector<8x128xf32>,
    } else {
    }
    %c0 = arith.constant 0 : index
    %c0_1 = arith.constant 0 : index
    %3 = vector.load %arg3[%c0, %c0_1] : memref<128x384xbf16, #tpu.memory_space<vmem>>, vector<128x384xbf16>
    %c0_2 = arith.constant 0 : index
    %c0_3 = arith.constant 0 : index
    %4 = vector.load %arg4[%c0_2, %c0_3] : memref<1x128xf32, #tpu.memory_space<vmem>>, vector<1x128xf32>
    %5 = vector.shape_cast %4 : vector<1x128xf32> to vector<1x128xf32>
    %6 = vector.broadcast %5 : vector<1x128xf32> to vector<8x128xf32>
    %c0_4 = arith.constant 0 : index
    %c0_5 = arith.constant 0 : index
    %7 = vector.load %arg6[%c0_4, %c0_5] : memref<8x128xf32, #tpu.memory_space<vmem>>, vector<8x128xf32>
    %c0_i32_6 = arith.constant 0 : i32
    %8 = arith.truncf %7 : vector<8x128xf32> to vector<8x128xbf16>
    %cst = arith.constant dense<0.000000e+00> : vector<8x384xf32>
    %9 = tpu.matmul %8, %3, %cst {dimension_numbers = #tpu.dot_dimension_numbers<[1], [0], [0], [1], [0, 0, 1, 1], [], []>} : vector<8x128xbf16>, vector<128x384xbf16>, vector<8x384xf32> -> vector<8x384xf32>
    %10 = arith.index_cast %c0_i32_6 : i32 to index
    %c0_7 = arith.constant 0 : index
    %c0_8 = arith.constant 0 : index
    %11 = vector.load %arg2[%10, %c0_7, %c0_8] : memref<8x8x384xbf16, #tpu.memory_space<vmem>>, vector<1x8x384xbf16>
    %12 = vector.shape_cast %11 : vector<1x8x384xbf16> to vector<8x384xbf16>
    %13 = arith.extf %12 : vector<8x384xbf16> to vector<8x384xf32>
    %14 = vector.extract_strided_slice %13 {offsets = [0, 0], sizes = [8, 128], strides = [1, 1]} : vector<8x384xf32> to vector<8x128xf32>
    %15 = vector.extract_strided_slice %9 {offsets = [0, 0], sizes = [8, 128], strides = [1, 1]} : vector<8x384xf32> to vector<8x128xf32>
    %16 = arith.addf %14, %15 : vector<8x128xf32>
    %17 = arith.negf %16 : vector<8x128xf32>
    %18 = math.exp %17 : vector<8x128xf32>
    %cst_9 = arith.constant 1.000000e+00 : f32
    %19 = vector.broadcast %cst_9 : f32 to vector<8x128xf32>
    %20 = arith.addf %19, %18 : vector<8x128xf32>
    %21 = arith.divf %19, %20 : vector<8x128xf32>
    %22 = vector.extract_strided_slice %13 {offsets = [0, 128], sizes = [8, 128], strides = [1, 1]} : vector<8x384xf32> to vector<8x128xf32>
    %23 = vector.extract_strided_slice %9 {offsets = [0, 128], sizes = [8, 128], strides = [1, 1]} : vector<8x384xf32> to vector<8x128xf32>
    %24 = arith.addf %22, %23 : vector<8x128xf32>
    %25 = arith.negf %24 : vector<8x128xf32>
    %26 = math.exp %25 : vector<8x128xf32>
    %cst_10 = arith.constant 1.000000e+00 : f32
    %27 = vector.broadcast %cst_10 : f32 to vector<8x128xf32>
    %28 = arith.addf %27, %26 : vector<8x128xf32>
    %29 = arith.divf %27, %28 : vector<8x128xf32>
    %30 = vector.extract_strided_slice %13 {offsets = [0, 256], sizes = [8, 128], strides = [1, 1]} : vector<8x384xf32> to vector<8x128xf32>
    %31 = vector.extract_strided_slice %9 {offsets = [0, 256], sizes = [8, 128], strides = [1, 1]} : vector<8x384xf32> to vector<8x128xf32>
    %32 = arith.addf %31, %6 : vector<8x128xf32>
    %33 = arith.mulf %21, %32 : vector<8x128xf32>
    %34 = arith.addf %30, %33 : vector<8x128xf32>
    %35 = math.tanh %34 : vector<8x128xf32>
    %cst_11 = arith.constant 1.000000e+00 : f32
    %36 = vector.broadcast %cst_11 : f32 to vector<8x128xf32>
    %37 = arith.subf %36, %29 : vector<8x128xf32>
    %38 = arith.mulf %37, %35 : vector<8x128xf32>
    %39 = arith.mulf %29, %7 : vector<8x128xf32>
    %40 = arith.addf %38, %39 : vector<8x128xf32>
    %41 = arith.index_cast %c0_i32_6 : i32 to index
    %c0_12 = arith.constant 0 : index
    %c0_13 = arith.constant 0 : index
    %42 = vector.load %arg5[%41, %c0_12, %c0_13] : memref<8x8x128xf32, #tpu.memory_space<vmem>>, vector<1x8x128xf32>
    %43 = vector.shape_cast %42 : vector<1x8x128xf32> to vector<8x128xf32>
    %44 = vector.shape_cast %40 : vector<8x128xf32> to vector<1x8x128xf32>
    tpu.vector_store %arg5[%41, %c0_12, %c0_13], %44 {strides = array<i32>} : memref<8x8x128xf32, #tpu.memory_space<vmem>>, vector<1x8x128xf32>,
    %c1_i32 = arith.constant 1 : i32
    %45 = arith.truncf %40 : vector<8x128xf32> to vector<8x128xbf16>
    %cst_14 = arith.constant dense<0.000000e+00> : vector<8x384xf32>
    %46 = tpu.matmul %45, %3, %cst_14 {dimension_numbers = #tpu.dot_dimension_numbers<[1], [0], [0], [1], [0, 0, 1, 1], [], []>} : vector<8x128xbf16>, vector<128x384xbf16>, vector<8x384xf32> -> vector<8x384xf32>
    %47 = arith.index_cast %c1_i32 : i32 to index
    %c0_15 = arith.constant 0 : index
    %c0_16 = arith.constant 0 : index
    %48 = vector.load %arg2[%47, %c0_15, %c0_16] : memref<8x8x384xbf16, #tpu.memory_space<vmem>>, vector<1x8x384xbf16>
    %49 = vector.shape_cast %48 : vector<1x8x384xbf16> to vector<8x384xbf16>
    %50 = arith.extf %49 : vector<8x384xbf16> to vector<8x384xf32>
    %51 = vector.extract_strided_slice %50 {offsets = [0, 0], sizes = [8, 128], strides = [1, 1]} : vector<8x384xf32> to vector<8x128xf32>
    %52 = vector.extract_strided_slice %46 {offsets = [0, 0], sizes = [8, 128], strides = [1, 1]} : vector<8x384xf32> to vector<8x128xf32>
    %53 = arith.addf %51, %52 : vector<8x128xf32>
    %54 = arith.negf %53 : vector<8x128xf32>
    %55 = math.exp %54 : vector<8x128xf32>
    %cst_17 = arith.constant 1.000000e+00 : f32
    %56 = vector.broadcast %cst_17 : f32 to vector<8x128xf32>
    %57 = arith.addf %56, %55 : vector<8x128xf32>
    %58 = arith.divf %56, %57 : vector<8x128xf32>
    %59 = vector.extract_strided_slice %50 {offsets = [0, 128], sizes = [8, 128], strides = [1, 1]} : vector<8x384xf32> to vector<8x128xf32>
    %60 = vector.extract_strided_slice %46 {offsets = [0, 128], sizes = [8, 128], strides = [1, 1]} : vector<8x384xf32> to vector<8x128xf32>
    %61 = arith.addf %59, %60 : vector<8x128xf32>
    %62 = arith.negf %61 : vector<8x128xf32>
    %63 = math.exp %62 : vector<8x128xf32>
    %cst_18 = arith.constant 1.000000e+00 : f32
    %64 = vector.broadcast %cst_18 : f32 to vector<8x128xf32>
    %65 = arith.addf %64, %63 : vector<8x128xf32>
    %66 = arith.divf %64, %65 : vector<8x128xf32>
    %67 = vector.extract_strided_slice %50 {offsets = [0, 256], sizes = [8, 128], strides = [1, 1]} : vector<8x384xf32> to vector<8x128xf32>
    %68 = vector.extract_strided_slice %46 {offsets = [0, 256], sizes = [8, 128], strides = [1, 1]} : vector<8x384xf32> to vector<8x128xf32>
    %69 = arith.addf %68, %6 : vector<8x128xf32>
    %70 = arith.mulf %58, %69 : vector<8x128xf32>
    %71 = arith.addf %67, %70 : vector<8x128xf32>
    %72 = math.tanh %71 : vector<8x128xf32>
    %cst_19 = arith.constant 1.000000e+00 : f32
    %73 = vector.broadcast %cst_19 : f32 to vector<8x128xf32>
    %74 = arith.subf %73, %66 : vector<8x128xf32>
    %75 = arith.mulf %74, %72 : vector<8x128xf32>
    %76 = arith.mulf %66, %40 : vector<8x128xf32>
    %77 = arith.addf %75, %76 : vector<8x128xf32>
    %78 = arith.index_cast %c1_i32 : i32 to index
    %c0_20 = arith.constant 0 : index
    %c0_21 = arith.constant 0 : index
    %79 = vector.load %arg5[%78, %c0_20, %c0_21] : memref<8x8x128xf32, #tpu.memory_space<vmem>>, vector<1x8x128xf32>
    %80 = vector.shape_cast %79 : vector<1x8x128xf32> to vector<8x128xf32>
    %81 = vector.shape_cast %77 : vector<8x128xf32> to vector<1x8x128xf32>
    tpu.vector_store %arg5[%78, %c0_20, %c0_21], %81 {strides = array<i32>} : memref<8x8x128xf32, #tpu.memory_space<vmem>>, vector<1x8x128xf32>,
    %c2_i32 = arith.constant 2 : i32
    %82 = arith.truncf %77 : vector<8x128xf32> to vector<8x128xbf16>
    %cst_22 = arith.constant dense<0.000000e+00> : vector<8x384xf32>
    %83 = tpu.matmul %82, %3, %cst_22 {dimension_numbers = #tpu.dot_dimension_numbers<[1], [0], [0], [1], [0, 0, 1, 1], [], []>} : vector<8x128xbf16>, vector<128x384xbf16>, vector<8x384xf32> -> vector<8x384xf32>
    %84 = arith.index_cast %c2_i32 : i32 to index
    %c0_23 = arith.constant 0 : index
    %c0_24 = arith.constant 0 : index
    %85 = vector.load %arg2[%84, %c0_23, %c0_24] : memref<8x8x384xbf16, #tpu.memory_space<vmem>>, vector<1x8x384xbf16>
    %86 = vector.shape_cast %85 : vector<1x8x384xbf16> to vector<8x384xbf16>
    %87 = arith.extf %86 : vector<8x384xbf16> to vector<8x384xf32>
    %88 = vector.extract_strided_slice %87 {offsets = [0, 0], sizes = [8, 128], strides = [1, 1]} : vector<8x384xf32> to vector<8x128xf32>
    %89 = vector.extract_strided_slice %83 {offsets = [0, 0], sizes = [8, 128], strides = [1, 1]} : vector<8x384xf32> to vector<8x128xf32>
    %90 = arith.addf %88, %89 : vector<8x128xf32>
    %91 = arith.negf %90 : vector<8x128xf32>
    %92 = math.exp %91 : vector<8x128xf32>
    %cst_25 = arith.constant 1.000000e+00 : f32
    %93 = vector.broadcast %cst_25 : f32 to vector<8x128xf32>
    %94 = arith.addf %93, %92 : vector<8x128xf32>
    %95 = arith.divf %93, %94 : vector<8x128xf32>
    %96 = vector.extract_strided_slice %87 {offsets = [0, 128], sizes = [8, 128], strides = [1, 1]} : vector<8x384xf32> to vector<8x128xf32>
    %97 = vector.extract_strided_slice %83 {offsets = [0, 128], sizes = [8, 128], strides = [1, 1]} : vector<8x384xf32> to vector<8x128xf32>
    %98 = arith.addf %96, %97 : vector<8x128xf32>
    %99 = arith.negf %98 : vector<8x128xf32>
    %100 = math.exp %99 : vector<8x128xf32>
    %cst_26 = arith.constant 1.000000e+00 : f32
    %101 = vector.broadcast %cst_26 : f32 to vector<8x128xf32>
    %102 = arith.addf %101, %100 : vector<8x128xf32>
    %103 = arith.divf %101, %102 : vector<8x128xf32>
    %104 = vector.extract_strided_slice %87 {offsets = [0, 256], sizes = [8, 128], strides = [1, 1]} : vector<8x384xf32> to vector<8x128xf32>
    %105 = vector.extract_strided_slice %83 {offsets = [0, 256], sizes = [8, 128], strides = [1, 1]} : vector<8x384xf32> to vector<8x128xf32>
    %106 = arith.addf %105, %6 : vector<8x128xf32>
    %107 = arith.mulf %95, %106 : vector<8x128xf32>
    %108 = arith.addf %104, %107 : vector<8x128xf32>
    %109 = math.tanh %108 : vector<8x128xf32>
    %cst_27 = arith.constant 1.000000e+00 : f32
    %110 = vector.broadcast %cst_27 : f32 to vector<8x128xf32>
    %111 = arith.subf %110, %103 : vector<8x128xf32>
    %112 = arith.mulf %111, %109 : vector<8x128xf32>
    %113 = arith.mulf %103, %77 : vector<8x128xf32>
    %114 = arith.addf %112, %113 : vector<8x128xf32>
    %115 = arith.index_cast %c2_i32 : i32 to index
    %c0_28 = arith.constant 0 : index
    %c0_29 = arith.constant 0 : index
    %116 = vector.load %arg5[%115, %c0_28, %c0_29] : memref<8x8x128xf32, #tpu.memory_space<vmem>>, vector<1x8x128xf32>
    %117 = vector.shape_cast %116 : vector<1x8x128xf32> to vector<8x128xf32>
    %118 = vector.shape_cast %114 : vector<8x128xf32> to vector<1x8x128xf32>
    tpu.vector_store %arg5[%115, %c0_28, %c0_29], %118 {strides = array<i32>} : memref<8x8x128xf32, #tpu.memory_space<vmem>>, vector<1x8x128xf32>,
    %c3_i32 = arith.constant 3 : i32
    %119 = arith.truncf %114 : vector<8x128xf32> to vector<8x128xbf16>
    %cst_30 = arith.constant dense<0.000000e+00> : vector<8x384xf32>
    %120 = tpu.matmul %119, %3, %cst_30 {dimension_numbers = #tpu.dot_dimension_numbers<[1], [0], [0], [1], [0, 0, 1, 1], [], []>} : vector<8x128xbf16>, vector<128x384xbf16>, vector<8x384xf32> -> vector<8x384xf32>
    %121 = arith.index_cast %c3_i32 : i32 to index
    %c0_31 = arith.constant 0 : index
    %c0_32 = arith.constant 0 : index
    %122 = vector.load %arg2[%121, %c0_31, %c0_32] : memref<8x8x384xbf16, #tpu.memory_space<vmem>>, vector<1x8x384xbf16>
    %123 = vector.shape_cast %122 : vector<1x8x384xbf16> to vector<8x384xbf16>
    %124 = arith.extf %123 : vector<8x384xbf16> to vector<8x384xf32>
    %125 = vector.extract_strided_slice %124 {offsets = [0, 0], sizes = [8, 128], strides = [1, 1]} : vector<8x384xf32> to vector<8x128xf32>
    %126 = vector.extract_strided_slice %120 {offsets = [0, 0], sizes = [8, 128], strides = [1, 1]} : vector<8x384xf32> to vector<8x128xf32>
    %127 = arith.addf %125, %126 : vector<8x128xf32>
    %128 = arith.negf %127 : vector<8x128xf32>
    %129 = math.exp %128 : vector<8x128xf32>
    %cst_33 = arith.constant 1.000000e+00 : f32
    %130 = vector.broadcast %cst_33 : f32 to vector<8x128xf32>
    %131 = arith.addf %130, %129 : vector<8x128xf32>
    %132 = arith.divf %130, %131 : vector<8x128xf32>
    %133 = vector.extract_strided_slice %124 {offsets = [0, 128], sizes = [8, 128], strides = [1, 1]} : vector<8x384xf32> to vector<8x128xf32>
    %134 = vector.extract_strided_slice %120 {offsets = [0, 128], sizes = [8, 128], strides = [1, 1]} : vector<8x384xf32> to vector<8x128xf32>
    %135 = arith.addf %133, %134 : vector<8x128xf32>
    %136 = arith.negf %135 : vector<8x128xf32>
    %137 = math.exp %136 : vector<8x128xf32>
    %cst_34 = arith.constant 1.000000e+00 : f32
    %138 = vector.broadcast %cst_34 : f32 to vector<8x128xf32>
    %139 = arith.addf %138, %137 : vector<8x128xf32>
    %140 = arith.divf %138, %139 : vector<8x128xf32>
    %141 = vector.extract_strided_slice %124 {offsets = [0, 256], sizes = [8, 128], strides = [1, 1]} : vector<8x384xf32> to vector<8x128xf32>
    %142 = vector.extract_strided_slice %120 {offsets = [0, 256], sizes = [8, 128], strides = [1, 1]} : vector<8x384xf32> to vector<8x128xf32>
    %143 = arith.addf %142, %6 : vector<8x128xf32>
    %144 = arith.mulf %132, %143 : vector<8x128xf32>
    %145 = arith.addf %141, %144 : vector<8x128xf32>
    %146 = math.tanh %145 : vector<8x128xf32>
    %cst_35 = arith.constant 1.000000e+00 : f32
    %147 = vector.broadcast %cst_35 : f32 to vector<8x128xf32>
    %148 = arith.subf %147, %140 : vector<8x128xf32>
    %149 = arith.mulf %148, %146 : vector<8x128xf32>
    %150 = arith.mulf %140, %114 : vector<8x128xf32>
    %151 = arith.addf %149, %150 : vector<8x128xf32>
    %152 = arith.index_cast %c3_i32 : i32 to index
    %c0_36 = arith.constant 0 : index
    %c0_37 = arith.constant 0 : index
    %153 = vector.load %arg5[%152, %c0_36, %c0_37] : memref<8x8x128xf32, #tpu.memory_space<vmem>>, vector<1x8x128xf32>
    %154 = vector.shape_cast %153 : vector<1x8x128xf32> to vector<8x128xf32>
    %155 = vector.shape_cast %151 : vector<8x128xf32> to vector<1x8x128xf32>
    tpu.vector_store %arg5[%152, %c0_36, %c0_37], %155 {strides = array<i32>} : memref<8x8x128xf32, #tpu.memory_space<vmem>>, vector<1x8x128xf32>,
    %c4_i32 = arith.constant 4 : i32
    %156 = arith.truncf %151 : vector<8x128xf32> to vector<8x128xbf16>
    %cst_38 = arith.constant dense<0.000000e+00> : vector<8x384xf32>
    %157 = tpu.matmul %156, %3, %cst_38 {dimension_numbers = #tpu.dot_dimension_numbers<[1], [0], [0], [1], [0, 0, 1, 1], [], []>} : vector<8x128xbf16>, vector<128x384xbf16>, vector<8x384xf32> -> vector<8x384xf32>
    %158 = arith.index_cast %c4_i32 : i32 to index
    %c0_39 = arith.constant 0 : index
    %c0_40 = arith.constant 0 : index
    %159 = vector.load %arg2[%158, %c0_39, %c0_40] : memref<8x8x384xbf16, #tpu.memory_space<vmem>>, vector<1x8x384xbf16>
    %160 = vector.shape_cast %159 : vector<1x8x384xbf16> to vector<8x384xbf16>
    %161 = arith.extf %160 : vector<8x384xbf16> to vector<8x384xf32>
    %162 = vector.extract_strided_slice %161 {offsets = [0, 0], sizes = [8, 128], strides = [1, 1]} : vector<8x384xf32> to vector<8x128xf32>
    %163 = vector.extract_strided_slice %157 {offsets = [0, 0], sizes = [8, 128], strides = [1, 1]} : vector<8x384xf32> to vector<8x128xf32>
    %164 = arith.addf %162, %163 : vector<8x128xf32>
    %165 = arith.negf %164 : vector<8x128xf32>
    %166 = math.exp %165 : vector<8x128xf32>
    %cst_41 = arith.constant 1.000000e+00 : f32
    %167 = vector.broadcast %cst_41 : f32 to vector<8x128xf32>
    %168 = arith.addf %167, %166 : vector<8x128xf32>
    %169 = arith.divf %167, %168 : vector<8x128xf32>
    %170 = vector.extract_strided_slice %161 {offsets = [0, 128], sizes = [8, 128], strides = [1, 1]} : vector<8x384xf32> to vector<8x128xf32>
    %171 = vector.extract_strided_slice %157 {offsets = [0, 128], sizes = [8, 128], strides = [1, 1]} : vector<8x384xf32> to vector<8x128xf32>
    %172 = arith.addf %170, %171 : vector<8x128xf32>
    %173 = arith.negf %172 : vector<8x128xf32>
    %174 = math.exp %173 : vector<8x128xf32>
    %cst_42 = arith.constant 1.000000e+00 : f32
    %175 = vector.broadcast %cst_42 : f32 to vector<8x128xf32>
    %176 = arith.addf %175, %174 : vector<8x128xf32>
    %177 = arith.divf %175, %176 : vector<8x128xf32>
    %178 = vector.extract_strided_slice %161 {offsets = [0, 256], sizes = [8, 128], strides = [1, 1]} : vector<8x384xf32> to vector<8x128xf32>
    %179 = vector.extract_strided_slice %157 {offsets = [0, 256], sizes = [8, 128], strides = [1, 1]} : vector<8x384xf32> to vector<8x128xf32>
    %180 = arith.addf %179, %6 : vector<8x128xf32>
    %181 = arith.mulf %169, %180 : vector<8x128xf32>
    %182 = arith.addf %178, %181 : vector<8x128xf32>
    %183 = math.tanh %182 : vector<8x128xf32>
    %cst_43 = arith.constant 1.000000e+00 : f32
    %184 = vector.broadcast %cst_43 : f32 to vector<8x128xf32>
    %185 = arith.subf %184, %177 : vector<8x128xf32>
    %186 = arith.mulf %185, %183 : vector<8x128xf32>
    %187 = arith.mulf %177, %151 : vector<8x128xf32>
    %188 = arith.addf %186, %187 : vector<8x128xf32>
    %189 = arith.index_cast %c4_i32 : i32 to index
    %c0_44 = arith.constant 0 : index
    %c0_45 = arith.constant 0 : index
    %190 = vector.load %arg5[%189, %c0_44, %c0_45] : memref<8x8x128xf32, #tpu.memory_space<vmem>>, vector<1x8x128xf32>
    %191 = vector.shape_cast %190 : vector<1x8x128xf32> to vector<8x128xf32>
    %192 = vector.shape_cast %188 : vector<8x128xf32> to vector<1x8x128xf32>
    tpu.vector_store %arg5[%189, %c0_44, %c0_45], %192 {strides = array<i32>} : memref<8x8x128xf32, #tpu.memory_space<vmem>>, vector<1x8x128xf32>,
    %c5_i32 = arith.constant 5 : i32
    %193 = arith.truncf %188 : vector<8x128xf32> to vector<8x128xbf16>
    %cst_46 = arith.constant dense<0.000000e+00> : vector<8x384xf32>
    %194 = tpu.matmul %193, %3, %cst_46 {dimension_numbers = #tpu.dot_dimension_numbers<[1], [0], [0], [1], [0, 0, 1, 1], [], []>} : vector<8x128xbf16>, vector<128x384xbf16>, vector<8x384xf32> -> vector<8x384xf32>
    %195 = arith.index_cast %c5_i32 : i32 to index
    %c0_47 = arith.constant 0 : index
    %c0_48 = arith.constant 0 : index
    %196 = vector.load %arg2[%195, %c0_47, %c0_48] : memref<8x8x384xbf16, #tpu.memory_space<vmem>>, vector<1x8x384xbf16>
    %197 = vector.shape_cast %196 : vector<1x8x384xbf16> to vector<8x384xbf16>
    %198 = arith.extf %197 : vector<8x384xbf16> to vector<8x384xf32>
    %199 = vector.extract_strided_slice %198 {offsets = [0, 0], sizes = [8, 128], strides = [1, 1]} : vector<8x384xf32> to vector<8x128xf32>
    %200 = vector.extract_strided_slice %194 {offsets = [0, 0], sizes = [8, 128], strides = [1, 1]} : vector<8x384xf32> to vector<8x128xf32>
    %201 = arith.addf %199, %200 : vector<8x128xf32>
    %202 = arith.negf %201 : vector<8x128xf32>
    %203 = math.exp %202 : vector<8x128xf32>
    %cst_49 = arith.constant 1.000000e+00 : f32
    %204 = vector.broadcast %cst_49 : f32 to vector<8x128xf32>
    %205 = arith.addf %204, %203 : vector<8x128xf32>
    %206 = arith.divf %204, %205 : vector<8x128xf32>
    %207 = vector.extract_strided_slice %198 {offsets = [0, 128], sizes = [8, 128], strides = [1, 1]} : vector<8x384xf32> to vector<8x128xf32>
    %208 = vector.extract_strided_slice %194 {offsets = [0, 128], sizes = [8, 128], strides = [1, 1]} : vector<8x384xf32> to vector<8x128xf32>
    %209 = arith.addf %207, %208 : vector<8x128xf32>
    %210 = arith.negf %209 : vector<8x128xf32>
    %211 = math.exp %210 : vector<8x128xf32>
    %cst_50 = arith.constant 1.000000e+00 : f32
    %212 = vector.broadcast %cst_50 : f32 to vector<8x128xf32>
    %213 = arith.addf %212, %211 : vector<8x128xf32>
    %214 = arith.divf %212, %213 : vector<8x128xf32>
    %215 = vector.extract_strided_slice %198 {offsets = [0, 256], sizes = [8, 128], strides = [1, 1]} : vector<8x384xf32> to vector<8x128xf32>
    %216 = vector.extract_strided_slice %194 {offsets = [0, 256], sizes = [8, 128], strides = [1, 1]} : vector<8x384xf32> to vector<8x128xf32>
    %217 = arith.addf %216, %6 : vector<8x128xf32>
    %218 = arith.mulf %206, %217 : vector<8x128xf32>
    %219 = arith.addf %215, %218 : vector<8x128xf32>
    %220 = math.tanh %219 : vector<8x128xf32>
    %cst_51 = arith.constant 1.000000e+00 : f32
    %221 = vector.broadcast %cst_51 : f32 to vector<8x128xf32>
    %222 = arith.subf %221, %214 : vector<8x128xf32>
    %223 = arith.mulf %222, %220 : vector<8x128xf32>
    %224 = arith.mulf %214, %188 : vector<8x128xf32>
    %225 = arith.addf %223, %224 : vector<8x128xf32>
    %226 = arith.index_cast %c5_i32 : i32 to index
    %c0_52 = arith.constant 0 : index
    %c0_53 = arith.constant 0 : index
    %227 = vector.load %arg5[%226, %c0_52, %c0_53] : memref<8x8x128xf32, #tpu.memory_space<vmem>>, vector<1x8x128xf32>
    %228 = vector.shape_cast %227 : vector<1x8x128xf32> to vector<8x128xf32>
    %229 = vector.shape_cast %225 : vector<8x128xf32> to vector<1x8x128xf32>
    tpu.vector_store %arg5[%226, %c0_52, %c0_53], %229 {strides = array<i32>} : memref<8x8x128xf32, #tpu.memory_space<vmem>>, vector<1x8x128xf32>,
    %c6_i32 = arith.constant 6 : i32
    %230 = arith.truncf %225 : vector<8x128xf32> to vector<8x128xbf16>
    %cst_54 = arith.constant dense<0.000000e+00> : vector<8x384xf32>
    %231 = tpu.matmul %230, %3, %cst_54 {dimension_numbers = #tpu.dot_dimension_numbers<[1], [0], [0], [1], [0, 0, 1, 1], [], []>} : vector<8x128xbf16>, vector<128x384xbf16>, vector<8x384xf32> -> vector<8x384xf32>
    %232 = arith.index_cast %c6_i32 : i32 to index
    %c0_55 = arith.constant 0 : index
    %c0_56 = arith.constant 0 : index
    %233 = vector.load %arg2[%232, %c0_55, %c0_56] : memref<8x8x384xbf16, #tpu.memory_space<vmem>>, vector<1x8x384xbf16>
    %234 = vector.shape_cast %233 : vector<1x8x384xbf16> to vector<8x384xbf16>
    %235 = arith.extf %234 : vector<8x384xbf16> to vector<8x384xf32>
    %236 = vector.extract_strided_slice %235 {offsets = [0, 0], sizes = [8, 128], strides = [1, 1]} : vector<8x384xf32> to vector<8x128xf32>
    %237 = vector.extract_strided_slice %231 {offsets = [0, 0], sizes = [8, 128], strides = [1, 1]} : vector<8x384xf32> to vector<8x128xf32>
    %238 = arith.addf %236, %237 : vector<8x128xf32>
    %239 = arith.negf %238 : vector<8x128xf32>
    %240 = math.exp %239 : vector<8x128xf32>
    %cst_57 = arith.constant 1.000000e+00 : f32
    %241 = vector.broadcast %cst_57 : f32 to vector<8x128xf32>
    %242 = arith.addf %241, %240 : vector<8x128xf32>
    %243 = arith.divf %241, %242 : vector<8x128xf32>
    %244 = vector.extract_strided_slice %235 {offsets = [0, 128], sizes = [8, 128], strides = [1, 1]} : vector<8x384xf32> to vector<8x128xf32>
    %245 = vector.extract_strided_slice %231 {offsets = [0, 128], sizes = [8, 128], strides = [1, 1]} : vector<8x384xf32> to vector<8x128xf32>
    %246 = arith.addf %244, %245 : vector<8x128xf32>
    %247 = arith.negf %246 : vector<8x128xf32>
    %248 = math.exp %247 : vector<8x128xf32>
    %cst_58 = arith.constant 1.000000e+00 : f32
    %249 = vector.broadcast %cst_58 : f32 to vector<8x128xf32>
    %250 = arith.addf %249, %248 : vector<8x128xf32>
    %251 = arith.divf %249, %250 : vector<8x128xf32>
    %252 = vector.extract_strided_slice %235 {offsets = [0, 256], sizes = [8, 128], strides = [1, 1]} : vector<8x384xf32> to vector<8x128xf32>
    %253 = vector.extract_strided_slice %231 {offsets = [0, 256], sizes = [8, 128], strides = [1, 1]} : vector<8x384xf32> to vector<8x128xf32>
    %254 = arith.addf %253, %6 : vector<8x128xf32>
    %255 = arith.mulf %243, %254 : vector<8x128xf32>
    %256 = arith.addf %252, %255 : vector<8x128xf32>
    %257 = math.tanh %256 : vector<8x128xf32>
    %cst_59 = arith.constant 1.000000e+00 : f32
    %258 = vector.broadcast %cst_59 : f32 to vector<8x128xf32>
    %259 = arith.subf %258, %251 : vector<8x128xf32>
    %260 = arith.mulf %259, %257 : vector<8x128xf32>
    %261 = arith.mulf %251, %225 : vector<8x128xf32>
    %262 = arith.addf %260, %261 : vector<8x128xf32>
    %263 = arith.index_cast %c6_i32 : i32 to index
    %c0_60 = arith.constant 0 : index
    %c0_61 = arith.constant 0 : index
    %264 = vector.load %arg5[%263, %c0_60, %c0_61] : memref<8x8x128xf32, #tpu.memory_space<vmem>>, vector<1x8x128xf32>
    %265 = vector.shape_cast %264 : vector<1x8x128xf32> to vector<8x128xf32>
    %266 = vector.shape_cast %262 : vector<8x128xf32> to vector<1x8x128xf32>
    tpu.vector_store %arg5[%263, %c0_60, %c0_61], %266 {strides = array<i32>} : memref<8x8x128xf32, #tpu.memory_space<vmem>>, vector<1x8x128xf32>,
    %c7_i32 = arith.constant 7 : i32
    %267 = arith.truncf %262 : vector<8x128xf32> to vector<8x128xbf16>
    %cst_62 = arith.constant dense<0.000000e+00> : vector<8x384xf32>
    %268 = tpu.matmul %267, %3, %cst_62 {dimension_numbers = #tpu.dot_dimension_numbers<[1], [0], [0], [1], [0, 0, 1, 1], [], []>} : vector<8x128xbf16>, vector<128x384xbf16>, vector<8x384xf32> -> vector<8x384xf32>
    %269 = arith.index_cast %c7_i32 : i32 to index
    %c0_63 = arith.constant 0 : index
    %c0_64 = arith.constant 0 : index
    %270 = vector.load %arg2[%269, %c0_63, %c0_64] : memref<8x8x384xbf16, #tpu.memory_space<vmem>>, vector<1x8x384xbf16>
    %271 = vector.shape_cast %270 : vector<1x8x384xbf16> to vector<8x384xbf16>
    %272 = arith.extf %271 : vector<8x384xbf16> to vector<8x384xf32>
    %273 = vector.extract_strided_slice %272 {offsets = [0, 0], sizes = [8, 128], strides = [1, 1]} : vector<8x384xf32> to vector<8x128xf32>
    %274 = vector.extract_strided_slice %268 {offsets = [0, 0], sizes = [8, 128], strides = [1, 1]} : vector<8x384xf32> to vector<8x128xf32>
    %275 = arith.addf %273, %274 : vector<8x128xf32>
    %276 = arith.negf %275 : vector<8x128xf32>
    %277 = math.exp %276 : vector<8x128xf32>
    %cst_65 = arith.constant 1.000000e+00 : f32
    %278 = vector.broadcast %cst_65 : f32 to vector<8x128xf32>
    %279 = arith.addf %278, %277 : vector<8x128xf32>
    %280 = arith.divf %278, %279 : vector<8x128xf32>
    %281 = vector.extract_strided_slice %272 {offsets = [0, 128], sizes = [8, 128], strides = [1, 1]} : vector<8x384xf32> to vector<8x128xf32>
    %282 = vector.extract_strided_slice %268 {offsets = [0, 128], sizes = [8, 128], strides = [1, 1]} : vector<8x384xf32> to vector<8x128xf32>
    %283 = arith.addf %281, %282 : vector<8x128xf32>
    %284 = arith.negf %283 : vector<8x128xf32>
    %285 = math.exp %284 : vector<8x128xf32>
    %cst_66 = arith.constant 1.000000e+00 : f32
    %286 = vector.broadcast %cst_66 : f32 to vector<8x128xf32>
    %287 = arith.addf %286, %285 : vector<8x128xf32>
    %288 = arith.divf %286, %287 : vector<8x128xf32>
    %289 = vector.extract_strided_slice %272 {offsets = [0, 256], sizes = [8, 128], strides = [1, 1]} : vector<8x384xf32> to vector<8x128xf32>
    %290 = vector.extract_strided_slice %268 {offsets = [0, 256], sizes = [8, 128], strides = [1, 1]} : vector<8x384xf32> to vector<8x128xf32>
    %291 = arith.addf %290, %6 : vector<8x128xf32>
    %292 = arith.mulf %280, %291 : vector<8x128xf32>
    %293 = arith.addf %289, %292 : vector<8x128xf32>
    %294 = math.tanh %293 : vector<8x128xf32>
    %cst_67 = arith.constant 1.000000e+00 : f32
    %295 = vector.broadcast %cst_67 : f32 to vector<8x128xf32>
    %296 = arith.subf %295, %288 : vector<8x128xf32>
    %297 = arith.mulf %296, %294 : vector<8x128xf32>
    %298 = arith.mulf %288, %262 : vector<8x128xf32>
    %299 = arith.addf %297, %298 : vector<8x128xf32>
    %300 = arith.index_cast %c7_i32 : i32 to index
    %c0_68 = arith.constant 0 : index
    %c0_69 = arith.constant 0 : index
    %301 = vector.load %arg5[%300, %c0_68, %c0_69] : memref<8x8x128xf32, #tpu.memory_space<vmem>>, vector<1x8x128xf32>
    %302 = vector.shape_cast %301 : vector<1x8x128xf32> to vector<8x128xf32>
    %303 = vector.shape_cast %299 : vector<8x128xf32> to vector<1x8x128xf32>
    tpu.vector_store %arg5[%300, %c0_68, %c0_69], %303 {strides = array<i32>} : memref<8x8x128xf32, #tpu.memory_space<vmem>>, vector<1x8x128xf32>,
    %c8_i32 = arith.constant 8 : i32
    %c0_70 = arith.constant 0 : index
    %c0_71 = arith.constant 0 : index
    %304 = vector.load %arg6[%c0_70, %c0_71] : memref<8x128xf32, #tpu.memory_space<vmem>>, vector<8x128xf32>
    tpu.vector_store %arg6[%c0_70, %c0_71], %299 {strides = array<i32>} : memref<8x128xf32, #tpu.memory_space<vmem>>, vector<8x128xf32>,
    return
  }
  func.func @transform_0(%arg0: i32, %arg1: i32) -> (i32, i32, i32) {
    %c0_i32 = arith.constant 0 : i32
    %c0_i32_0 = arith.constant 0 : i32
    return %arg1, %arg0, %c0_i32 : i32, i32, i32
  }
  func.func @transform_1(%arg0: i32, %arg1: i32) -> (i32, i32) {
    %c0_i32 = arith.constant 0 : i32
    %c0_i32_0 = arith.constant 0 : i32
    %c0_i32_1 = arith.constant 0 : i32
    return %c0_i32, %c0_i32_0 : i32, i32
  }
  func.func @transform_2(%arg0: i32, %arg1: i32) -> (i32, i32) {
    %c0_i32 = arith.constant 0 : i32
    %c0_i32_0 = arith.constant 0 : i32
    %c0_i32_1 = arith.constant 0 : i32
    return %c0_i32, %c0_i32_0 : i32, i32
  }
  func.func @transform_3(%arg0: i32, %arg1: i32) -> (i32, i32, i32) {
    %c0_i32 = arith.constant 0 : i32
    %c0_i32_0 = arith.constant 0 : i32
    return %arg1, %arg0, %c0_i32 : i32, i32, i32
  }
}

</mosaic_0001>

<bundles_post_ra>
// kernel: encoder_rnn_forward.1
= control target key start
LH: loop header
LB: loop body
LE: loop exit
PB: predicated region body
PF: predicated region fallthrough
CT: control target
= control target key end

     0   :  { %8 = vsyncpa [#allocation4], 0  ;;  %s2105_s0 = inlined_call_operand.hbm [shape: bf16[8,8,384], index: 0, kind: input, shape index: {}]   ;;  %s2106_s1 = inlined_call_operand.hbm [shape: bf16[128,384], index: 1, kind: input, shape index: {}]   ;;  %s2107_s2 = inlined_call_operand.hbm [shape: f32[1,128], index: 2, kind: input, shape index: {}]   ;;  %s2108_s3 = inlined_call_operand.hbm [shape: f32[8,8,128], index: 3, kind: output, shape index: {}]  }
   0x1   :  { %9 = vsyncpa [#allocation7], 0 }
   0x2   :  { %10 = vsyncpa [#allocation5], 0  ;;  %s1640_s12 = smov [#allocation6]   ;;  %s1641_s14 = smov [#allocation3]  }
   0x3   :  { %s28_s13 = sshll.u32 %s1640_s12, 4  ;;  %s16_s15 = sshll.u32 %s1641_s14, 4  ;;  %s29_s13 = int_to_ptr.vmem [resolvable:$true] %s28_s13  ;;  %s1672_s15 = int_to_ptr.vmem [resolvable:$true] %s16_s15 }
   0x4   :  { %s1546_s18 = scalar_lea.hbm %s2106_s1, 3072 }
   0x5   :  { %p1547_p0 = scmp.ne.s32.totalorder %s2106_s1, %s1546_s18  ;;  %p1550_p1 = scmp.lt.u32.totalorder %s1546_s18, %s2106_s1 }
   0x7   :  { %p1552_p2 = pnand %p1550_p1, %p1547_p0 }
   0x9   :  { %1555 = shalt.err (!%p1552_p2)
}
   0xa   :  { %s1556_s23 = scalar_lea.vmem %s29_s13, 3072  ;;  %p1561_p4 = scmp.lt.s32.totalorder %s29_s13, %s29_s13 }
   0xb   :  { %p1557_p3 = scmp.ne.s32.totalorder %s29_s13, %s1556_s23  ;;  %p1562_p5 = scmp.lt.s32.totalorder %s1556_s23, %s1556_s23 }
   0xd   :  { %p1563_p6 = por %p1562_p5, %p1561_p4 }
   0xf   :  { %p1564_p7 = pnand %p1563_p6, %p1557_p3 }
  0x11   :  { %1567 = shalt.err (!%p1564_p7)
}
  0x12   :  { %s1642_s24 = smov 192   ;;  %s1643_s25 = smov 12  }
  0x13   :  { %34 = dma.hbm_to_vmem [thread:$0]  %s2106_s1, 3072, %s29_s13, [#allocation7], %s1642_s24, %s1642_s24, %s1643_s25  }
  0x14   :  { %s1568_s30 = scalar_lea.hbm %s2105_s0, 1536 }
  0x15   :  { %p1569_p8 = scmp.ne.s32.totalorder %s2105_s0, %s1568_s30  ;;  %p1572_p9 = scmp.lt.u32.totalorder %s1568_s30, %s2105_s0 }
  0x17   :  { %p1574_p10 = pnand %p1572_p9, %p1569_p8 }
  0x19   :  { %1577 = shalt.err (!%p1574_p10)
}
  0x1a   :  { %s1578_s8 = scalar_lea.vmem %s1672_s15, 1536  ;;  %p1583_p12 = scmp.lt.s32.totalorder %s1672_s15, %s1672_s15 }
  0x1b   :  { %p1579_p11 = scmp.ne.s32.totalorder %s1672_s15, %s1578_s8  ;;  %p1584_p13 = scmp.lt.s32.totalorder %s1578_s8, %s1578_s8 }
  0x1d   :  { %p1585_p0 = por %p1584_p13, %p1583_p12 }
  0x1f   :  { %p1586_p1 = pnand %p1585_p0, %p1579_p11 }
  0x21   :  { %1589 = shalt.err (!%p1586_p1)
}
  0x22   :  { %22 = dma.hbm_to_vmem [thread:$0]  %s2105_s0, 1536, %s1672_s15, [#allocation4], %s1642_s24, %s1642_s24, %s1643_s25  }
  0x23   :  { %s1644_s10 = smov [#allocation8]   ;;  %s1590_s14 = scalar_lea.hbm %s2107_s2, 16 }
  0x24   :  { %s41_s11 = sshll.u32 %s1644_s10, 4  ;;  %p1591_p2 = scmp.ne.s32.totalorder %s2107_s2, %s1590_s14  ;;  %s42_s11 = int_to_ptr.vmem [resolvable:$true] %s41_s11 }
  0x25   :  { %p1594_p3 = scmp.lt.u32.totalorder %s1590_s14, %s2107_s2 }
  0x27   :  { %p1596_p4 = pnand %p1594_p3, %p1591_p2 }
  0x29   :  { %1599 = shalt.err (!%p1596_p4)
}
  0x2a   :  { %s1600_s20 = scalar_lea.vmem %s42_s11, 16  ;;  %s1604_s0 = scalar_lea.vmem %s42_s11, 32 }
  0x2b   :  { %p1601_p5 = scmp.ne.s32.totalorder %s42_s11, %s1600_s20  ;;  %p1605_p6 = scmp.lt.s32.totalorder %s42_s11, %s42_s11 }
  0x2c   :  { %p1606_p7 = scmp.lt.s32.totalorder %s1604_s0, %s1600_s20 }
  0x2e   :  { %p1607_p8 = por %p1606_p7, %p1605_p6 }
  0x30   :  { %p1608_p9 = pnand %p1607_p8, %p1601_p5 }
  0x32   :  { %1611 = shalt.err (!%p1608_p9)
}
  0x33   :  { %44 = dma.hbm_to_vmem [thread:$0]  %s2107_s2, 16, %s42_s11, [#allocation7]  }
  0x34   :  { %1634 = dma.done.wait [#allocation4], 1536  }
  0x35   :  { %1635 = vsyncadd [#allocation4], 4294965760 }
  0x36   :  { %1636 = dma.done.wait [#allocation7], 3088  }
  0x37   :  { %1637 = vsyncadd [#allocation7], 4294964208  ;;  %v1645_v0 = vmov 0.0   ;;  %v1646_v1 = vmov 0   ;;  %vm1647_vm0 = vmmov 0   ;;  %v1648_v25 = vmov 0.0|0.0  }
  0x38   :  { %1254 = vmatprep.subr.bf16.mxu1 %v1645_v0  ;;  %261 = vmatprep.mubr.bf16.mxu0 %v1646_v1  ;;  %v1719_v2 = vld [vmem:[#allocation6 + $0x4] ss:$12 sps:$4 sm:$0xff]   ;;  %v1721_v3 = vld [vmem:[#allocation6] ss:$12 sps:$4 sm:$0xff]   ;;  %v1724_v4 = vld [vmem:[#allocation6 + $0x1c] ss:$12 sps:$4 sm:$0xff]  }
  0x39   :  { %1270 = vmatprep.mubr.msk.bf16.mxu1 %vm1647_vm0, %v1645_v0  ;;  %229 = vmatprep.subr.bf16.mxu0 %v1719_v2  ;;  %v1727_v5 = vld [vmem:[#allocation6 + $0x18] ss:$12 sps:$4 sm:$0xff]   ;;  %v1730_v6 = vld [vmem:[#allocation6 + $0x34] ss:$12 sps:$4 sm:$0xff]   ;;  %v1733_v7 = vld [vmem:[#allocation6 + $0x30] ss:$12 sps:$4 sm:$0xff]  }
  0x3a   :  { %230 = vmatpush1.bf16.msra.mxu0 %v1721_v3  ;;  %v1736_v8 = vld [vmem:[#allocation6 + $0x4c] ss:$12 sps:$4 sm:$0xff]   ;;  %v1738_v9 = vld [vmem:[#allocation6 + $0x8] ss:$12 sps:$4 sm:$0xff]   ;;  %v1745_v11 = vld [vmem:[#allocation6 + $0x64] ss:$12 sps:$4 sm:$0xff]  }
  0x3b   :  { %231 = vmatprep.subr.bf16.mxu0 %v1724_v4  ;;  %v1741_v10 = vld [vmem:[#allocation6 + $0x48] ss:$12 sps:$4 sm:$0xff]   ;;  %1255 = vmatpush3.bf16.msra.mxu1 %v1738_v9  ;;  %v1748_v12 = vld [vmem:[#allocation6 + $0x20] ss:$12 sps:$4 sm:$0xff]   ;;  %v1754_v14 = vld [vmem:[#allocation6 + $0x38] ss:$12 sps:$4 sm:$0xff]  }
  0x3c   :  { %1256 = vmatprep.subr.bf16.mxu1 %v1645_v0  ;;  %v1750_v13 = vld [vmem:[#allocation6 + $0x60] ss:$12 sps:$4 sm:$0xff]   ;;  %v1757_v15 = vld [vmem:[#allocation6 + $0x7c] ss:$12 sps:$4 sm:$0xff]   ;;  %v1761_v16 = vld [vmem:[#allocation6 + $0x78] ss:$12 sps:$4 sm:$0xff]  }
  0x3d   :  { %v1764_v17 = vld [vmem:[#allocation6 + $0x50] ss:$12 sps:$4 sm:$0xff]   ;;  %v1767_v18 = vld [vmem:[#allocation6 + $0x94] ss:$12 sps:$4 sm:$0xff]   ;;  %v1777_v21 = vld [vmem:[#allocation6 + $0xac] ss:$12 sps:$4 sm:$0xff]  }
  0x3e   :  { %232 = vmatpush1.bf16.msra.mxu0 %v1727_v5  ;;  %v1771_v19 = vld [vmem:[#allocation6 + $0x90] ss:$12 sps:$4 sm:$0xff]   ;;  %v1774_v20 = vld [vmem:[#allocation6 + $0x68] ss:$12 sps:$4 sm:$0xff]   ;;  %v1784_v23 = vld [vmem:[#allocation6 + $0x80] ss:$12 sps:$4 sm:$0xff]  }
  0x3f   :  { %233 = vmatprep.subr.bf16.mxu0 %v1730_v6  ;;  %1257 = vmatpush3.bf16.msra.mxu1 %v1748_v12  ;;  %v1781_v22 = vld [vmem:[#allocation6 + $0xa8] ss:$12 sps:$4 sm:$0xff]   ;;  %v1790_v24 = vld [vmem:[#allocation6 + $0x98] ss:$12 sps:$4 sm:$0xff]   ;;  %v1795_v26 = vld [vmem:[#allocation6 + $0xb0] ss:$12 sps:$4 sm:$0xff]  }
  0x40   :  { %1258 = vmatprep.subr.bf16.mxu1 %v1645_v0  ;;  %v310_v27 = vld [vmem:[#allocation3] sm:$0xff]  ;;  %v1837_v46 = vld [vmem:[#allocation3 + $0x8] ss:$12 sps:$4 sm:$0xff]   ;;  %v421_v60 = vld [vmem:[#allocation3 + $0xc] sm:$0xff]  ;;  %s1649_s2 = smov [#allocation9]  }
  0x41   :  { %v312_v28 = vunpack.c.l.bf16 %v310_v27  ;;  %v313_v30 = vunpack.c.h.bf16 %v310_v27  ;;  %v1835_v45 = vld [vmem:[#allocation8] ss:$0 sm:$0xff]  ;;  %v314_v49 = vunpack.c.l.bf16 %v1837_v46  ;;  %v423_v61 = vunpack.c.l.bf16 %v421_v60  ;;  %s1128_s22 = sshll.u32 %s1649_s2, 4  ;;  %s1129_s22 = int_to_ptr.vmem [resolvable:$true] %s1128_s22 }
  0x42   :  { %234 = vmatpush1.bf16.msra.mxu0 %v1733_v7  ;;  %s1612_s23 = scalar_lea.vmem %s1129_s22, 1024  ;;  %p1617_p11 = scmp.lt.s32.totalorder %s1129_s22, %s1129_s22 }
  0x43   :  { %235 = vmatprep.subr.bf16.mxu0 %v1736_v8  ;;  %1259 = vmatpush3.bf16.msra.mxu1 %v1754_v14  ;;  %p1613_p10 = scmp.ne.s32.totalorder %s1129_s22, %s1612_s23  ;;  %p1618_p12 = scmp.lt.s32.totalorder %s1612_s23, %s1612_s23 }
  0x44   :  { %1260 = vmatprep.subr.bf16.mxu1 %v1645_v0 }
  0x45   :  { %p1619_p13 = por %p1618_p12, %p1617_p11 }
  0x46   :  { %236 = vmatpush1.bf16.msra.mxu0 %v1741_v10 }
  0x47   :  { %237 = vmatprep.subr.bf16.mxu0 %v1745_v11  ;;  %1261 = vmatpush3.bf16.msra.mxu1 %v1764_v17  ;;  %p1620_p0 = pnand %p1619_p13, %p1613_p10 }
  0x48   :  { %1262 = vmatprep.subr.bf16.mxu1 %v1645_v0 }
  0x4a   :  { %238 = vmatpush1.bf16.msra.mxu0 %v1750_v13 }
  0x4b   :  { %239 = vmatprep.subr.bf16.mxu0 %v1757_v15  ;;  %1263 = vmatpush3.bf16.msra.mxu1 %v1774_v20 }
  0x4c   :  { %1264 = vmatprep.subr.bf16.mxu1 %v1645_v0 }
  0x4e   :  { %240 = vmatpush1.bf16.msra.mxu0 %v1761_v16 }
  0x4f   :  { %241 = vmatprep.subr.bf16.mxu0 %v1767_v18  ;;  %1265 = vmatpush3.bf16.msra.mxu1 %v1784_v23 }
  0x50   :  { %1266 = vmatprep.subr.bf16.mxu1 %v1645_v0 }
  0x52   :  { %242 = vmatpush1.bf16.msra.mxu0 %v1771_v19 }
  0x53   :  { %243 = vmatprep.subr.bf16.mxu0 %v1777_v21  ;;  %1267 = vmatpush3.bf16.msra.mxu1 %v1790_v24 }
  0x54   :  { %1268 = vmatprep.subr.bf16.mxu1 %v1645_v0 }
  0x56   :  { %244 = vmatpush1.bf16.msra.mxu0 %v1781_v22 }
  0x57   :  { %339 = vmatprep.subr.bf16.mxu0 %v1719_v2  ;;  %1269 = vmatpush3.bf16.msra.mxu1 %v1795_v26 }
  0x58   :  { %1274 = vmatprep.subr.bf16.mxu1 %v1645_v0 }
  0x59   :  { %262 = vmatmul.mubr.bf16.vlgmr.msra.gmra.mrb[0].mxu0 %v1648_v25 }
  0x5a   :  { %340 = vmatpush1.bf16.msra.mxu0 %v1721_v3  ;;  %371 = vmatprep.mubr.bf16.mxu0 %v1646_v1 }
  0x5b   :  { %341 = vmatprep.subr.bf16.mxu0 %v1724_v4  ;;  %1271 = vmatmul.mubr.bf16.vlgmr.msra.gmra.mrb[0].mxu1 %v1648_v25  ;;  %v424_v25 = vunpack.c.h.bf16 %v421_v60 }
  0x5c   :  { %1275 = vmatpush3.bf16.msra.mxu1 %v1738_v9  ;;  %1290 = vmatprep.mubr.msk.bf16.mxu1 %vm1647_vm0, %v1645_v0 }
  0x5d   :  { %1276 = vmatprep.subr.bf16.mxu1 %v1645_v0 }
  0x5e   :  { %342 = vmatpush1.bf16.msra.mxu0 %v1727_v5 }
  0x5f   :  { %343 = vmatprep.subr.bf16.mxu0 %v1730_v6 }
  0x60   :  { %1277 = vmatpush3.bf16.msra.mxu1 %v1748_v12 }
  0x61   :  { %1278 = vmatprep.subr.bf16.mxu1 %v1645_v0 }
  0x62   :  { %344 = vmatpush1.bf16.msra.mxu0 %v1733_v7 }
  0x63   :  { %345 = vmatprep.subr.bf16.mxu0 %v1736_v8 }
  0x64   :  { %1279 = vmatpush3.bf16.msra.mxu1 %v1754_v14 }
  0x65   :  { %1280 = vmatprep.subr.bf16.mxu1 %v1645_v0 }
  0x66   :  { %346 = vmatpush1.bf16.msra.mxu0 %v1741_v10 }
  0x67   :  { %347 = vmatprep.subr.bf16.mxu0 %v1745_v11 }
  0x68   :  { %1281 = vmatpush3.bf16.msra.mxu1 %v1764_v17 }
  0x69   :  { %1282 = vmatprep.subr.bf16.mxu1 %v1645_v0 }
  0x6a   :  { %348 = vmatpush1.bf16.msra.mxu0 %v1750_v13 }
  0x6b   :  { %349 = vmatprep.subr.bf16.mxu0 %v1757_v15 }
  0x6c   :  { %1283 = vmatpush3.bf16.msra.mxu1 %v1774_v20 }
  0x6d   :  { %1284 = vmatprep.subr.bf16.mxu1 %v1645_v0 }
  0x6e   :  { %350 = vmatpush1.bf16.msra.mxu0 %v1761_v16 }
  0x6f   :  { %351 = vmatprep.subr.bf16.mxu0 %v1767_v18 }
  0x70   :  { %1285 = vmatpush3.bf16.msra.mxu1 %v1784_v23 }
  0x71   :  { %1286 = vmatprep.subr.bf16.mxu1 %v1645_v0 }
  0x72   :  { %352 = vmatpush1.bf16.msra.mxu0 %v1771_v19 }
  0x73   :  { %353 = vmatprep.subr.bf16.mxu0 %v1777_v21 }
  0x74   :  { %1287 = vmatpush3.bf16.msra.mxu1 %v1790_v24 }
  0x75   :  { %1288 = vmatprep.subr.bf16.mxu1 %v1645_v0 }
  0x76   :  { %354 = vmatpush1.bf16.msra.mxu0 %v1781_v22 }
  0x77   :  { %451 = vmatprep.subr.bf16.mxu0 %v1719_v2 }
  0x78   :  { %1289 = vmatpush3.bf16.msra.mxu1 %v1795_v26 }
  0x79   :  { %1294 = vmatprep.subr.bf16.mxu1 %v1645_v0 }
 0x12c   :  { %v263_v29 = vpop.f32.mrb[0].mxu0 }
 0x12d   :  { %v315_v31 = vadd.f32 %v312_v28, %v263_v29  ;;  %v265_v32 = vpop.f32.mrb[1].mxu0 }
 0x12e   :  { %v267_v33 = vpop.f32.mrb[2].mxu0  ;;  %v322_v36 = vadd.f32 %v313_v30, %v265_v32  ;;  %v304_v38 = vpop.f32.mrb[0].mxu1 }
 0x12f   :  { %v1166_v34 = vmul.f32 -1.442695, %v315_v31  ;;  %v268_v35 = vpop.f32.mrb[3].mxu0  ;;  %v1272_v39 = vpop.f32.mrb[1].mxu1  ;;  %v329_v48 = vadd.f32 %v1835_v45, %v304_v38 }
 0x130   :  { %v1167_v37 = vmul.f32 -1.442695, %v322_v36  ;;  %v307_v40 = vpop.f32.mrb[2].mxu1 }
 0x131   :  { %1458 = vpow2.f32 %v1166_v34  ;;  %v1273_v41 = vpop.f32.mrb[3].mxu1 }
 0x132   :  { %1460 = vpow2.f32 %v1167_v37  ;;  %v425_v41 = vunpack.c.h.bf16 %v1837_v46 }
 0x13b   :  { %v1459_v42 = vpop.eup %1458 }
 0x13c   :  { %v319_v43 = vadd.f32 1.0, %v1459_v42  ;;  %v1461_v44 = vpop.eup %1460 }
 0x13d   :  { %v326_v47 = vadd.f32 1.0, %v1461_v44 }
 0x13e   :  { %1462 = vrcp.f32 %v319_v43 }
 0x13f   :  { %1464 = vrcp.f32 %v326_v47 }
 0x148   :  { %v1463_v50 = vpop.eup %1462 }
 0x149   :  { %v330_v51 = vmul.f32 %v1463_v50, %v329_v48  ;;  %v1465_v53 = vpop.eup %1464 }
 0x14a   :  { %v333_v54 = vsub.f32 1.0, %v1465_v53  ;;  %v335_v57 = vmul.f32 0.0, %v1465_v53 }
 0x14b   :  { %v331_v52 = vadd.f32 %v330_v51, %v314_v49 }
 0x14d   :  { %1466 = vtanh.f32 %v331_v52 }
 0x157   :  { %v1467_v55 = vpop.eup %1466 }
 0x158   :  { %v334_v56 = vmul.f32 %v1467_v55, %v333_v54  ;;  %v533_v54 = vld [vmem:[#allocation3 + $0x18] sm:$0xff] }
 0x159   :  { %v535_v55 = vunpack.c.l.bf16 %v533_v54 }
 0x15a   :  { %v1841_v58 = vadd.f32 %v335_v57, %v334_v56 }
 0x15c   :  { %337 = vst [vmem:[#allocation9] sm:$0xff] %v1841_v58  ;;  %v338_v59 = vpack.c.bf16 %v1841_v58, %v1841_v58 }
 0x15e   :  { %372 = vmatmul.mubr.bf16.vlgmr.msra.gmra.mrb[4].mxu0 %v338_v59  ;;  %1291 = vmatmul.mubr.bf16.vlgmr.msra.gmra.mrb[4].mxu1 %v338_v59 }
 0x15f   :  { %452 = vmatpush1.bf16.msra.mxu0 %v1721_v3  ;;  %1295 = vmatpush3.bf16.msra.mxu1 %v1738_v9 }
 0x160   :  { %453 = vmatprep.subr.bf16.mxu0 %v1724_v4  ;;  %1296 = vmatprep.subr.bf16.mxu1 %v1645_v0 }
 0x161   :  { %483 = vmatprep.mubr.bf16.mxu0 %v1646_v1  ;;  %1310 = vmatprep.mubr.msk.bf16.mxu1 %vm1647_vm0, %v1645_v0 }
 0x163   :  { %454 = vmatpush1.bf16.msra.mxu0 %v1727_v5  ;;  %1297 = vmatpush3.bf16.msra.mxu1 %v1748_v12 }
 0x164   :  { %455 = vmatprep.subr.bf16.mxu0 %v1730_v6  ;;  %1298 = vmatprep.subr.bf16.mxu1 %v1645_v0 }
 0x167   :  { %456 = vmatpush1.bf16.msra.mxu0 %v1733_v7  ;;  %1299 = vmatpush3.bf16.msra.mxu1 %v1754_v14 }
 0x168   :  { %457 = vmatprep.subr.bf16.mxu0 %v1736_v8  ;;  %1300 = vmatprep.subr.bf16.mxu1 %v1645_v0 }
 0x16b   :  { %458 = vmatpush1.bf16.msra.mxu0 %v1741_v10  ;;  %1301 = vmatpush3.bf16.msra.mxu1 %v1764_v17 }
 0x16c   :  { %459 = vmatprep.subr.bf16.mxu0 %v1745_v11  ;;  %1302 = vmatprep.subr.bf16.mxu1 %v1645_v0 }
 0x16f   :  { %460 = vmatpush1.bf16.msra.mxu0 %v1750_v13  ;;  %1303 = vmatpush3.bf16.msra.mxu1 %v1774_v20 }
 0x170   :  { %461 = vmatprep.subr.bf16.mxu0 %v1757_v15  ;;  %1304 = vmatprep.subr.bf16.mxu1 %v1645_v0 }
 0x173   :  { %462 = vmatpush1.bf16.msra.mxu0 %v1761_v16  ;;  %1305 = vmatpush3.bf16.msra.mxu1 %v1784_v23 }
 0x174   :  { %463 = vmatprep.subr.bf16.mxu0 %v1767_v18  ;;  %1306 = vmatprep.subr.bf16.mxu1 %v1645_v0 }
 0x177   :  { %464 = vmatpush1.bf16.msra.mxu0 %v1771_v19  ;;  %1307 = vmatpush3.bf16.msra.mxu1 %v1790_v24 }
 0x178   :  { %465 = vmatprep.subr.bf16.mxu0 %v1777_v21  ;;  %1308 = vmatprep.subr.bf16.mxu1 %v1645_v0 }
 0x17b   :  { %466 = vmatpush1.bf16.msra.mxu0 %v1781_v22  ;;  %1309 = vmatpush3.bf16.msra.mxu1 %v1795_v26 }
 0x17c   :  { %563 = vmatprep.subr.bf16.mxu0 %v1719_v2  ;;  %1314 = vmatprep.subr.bf16.mxu1 %v1645_v0 }
 0x231   :  { %v373_v62 = vpop.f32.mrb[4].mxu0  ;;  %v414_v63 = vpop.f32.mrb[4].mxu1 }
 0x232   :  { %v426_v27 = vadd.f32 %v423_v61, %v373_v62  ;;  %v375_v28 = vpop.f32.mrb[5].mxu0  ;;  %v1292_v29 = vpop.f32.mrb[5].mxu1  ;;  %v440_v42 = vadd.f32 %v1835_v45, %v414_v63 }
 0x233   :  { %v377_v30 = vpop.f32.mrb[6].mxu0  ;;  %v417_v31 = vpop.f32.mrb[6].mxu1  ;;  %v433_v35 = vadd.f32 %v424_v25, %v375_v28 }
 0x234   :  { %v1168_v32 = vmul.f32 -1.442695, %v426_v27  ;;  %v378_v33 = vpop.f32.mrb[7].mxu0  ;;  %v1293_v34 = vpop.f32.mrb[7].mxu1 }
 0x235   :  { %v1169_v36 = vmul.f32 -1.442695, %v433_v35  ;;  %v1924_v34 = vld [vmem:[#allocation3 + $0x20] ss:$12 sps:$4 sm:$0xff]  }
 0x236   :  { %1468 = vpow2.f32 %v1168_v32 }
 0x237   :  { %1470 = vpow2.f32 %v1169_v36  ;;  %v537_v36 = vunpack.c.l.bf16 %v1924_v34 }
 0x240   :  { %v1469_v37 = vpop.eup %1468 }
 0x241   :  { %v430_v38 = vadd.f32 1.0, %v1469_v37  ;;  %v1471_v39 = vpop.eup %1470 }
 0x242   :  { %v437_v40 = vadd.f32 1.0, %v1471_v39 }
 0x243   :  { %1472 = vrcp.f32 %v430_v38 }
 0x244   :  { %1474 = vrcp.f32 %v437_v40 }
 0x24d   :  { %v1473_v43 = vpop.eup %1472 }
 0x24e   :  { %v441_v44 = vmul.f32 %v1473_v43, %v440_v42  ;;  %v1475_v48 = vpop.eup %1474 }
 0x24f   :  { %v444_v49 = vsub.f32 1.0, %v1475_v48  ;;  %v446_v52 = vmul.f32 %v1475_v48, %v1841_v58  ;;  %v536_v58 = vunpack.c.h.bf16 %v533_v54 }
 0x250   :  { %v442_v47 = vadd.f32 %v441_v44, %v425_v41 }
 0x252   :  { %1476 = vtanh.f32 %v442_v47 }
 0x25c   :  { %v1477_v50 = vpop.eup %1476 }
 0x25d   :  { %v445_v51 = vmul.f32 %v1477_v50, %v444_v49  ;;  %v645_v50 = vld [vmem:[#allocation3 + $0x24] sm:$0xff] }
 0x25f   :  { %v1884_v53 = vadd.f32 %v446_v52, %v445_v51  ;;  %v647_v51 = vunpack.c.l.bf16 %v645_v50 }
 0x261   :  { %449 = vst [vmem:[#allocation9 + $0x8] sm:$0xff] %v1884_v53  ;;  %v450_v46 = vpack.c.bf16 %v1884_v53, %v1884_v53 }
 0x263   :  { %484 = vmatmul.mubr.bf16.vlgmr.msra.gmra.mrb[8].mxu0 %v450_v46  ;;  %1311 = vmatmul.mubr.bf16.vlgmr.msra.gmra.mrb[8].mxu1 %v450_v46  ;;  %v648_v46 = vunpack.c.h.bf16 %v645_v50 }
 0x264   :  { %564 = vmatpush1.bf16.msra.mxu0 %v1721_v3  ;;  %1315 = vmatpush3.bf16.msra.mxu1 %v1738_v9 }
 0x265   :  { %565 = vmatprep.subr.bf16.mxu0 %v1724_v4  ;;  %1316 = vmatprep.subr.bf16.mxu1 %v1645_v0 }
 0x266   :  { %595 = vmatprep.mubr.bf16.mxu0 %v1646_v1  ;;  %1330 = vmatprep.mubr.msk.bf16.mxu1 %vm1647_vm0, %v1645_v0 }
 0x268   :  { %566 = vmatpush1.bf16.msra.mxu0 %v1727_v5  ;;  %1317 = vmatpush3.bf16.msra.mxu1 %v1748_v12 }
 0x269   :  { %567 = vmatprep.subr.bf16.mxu0 %v1730_v6  ;;  %1318 = vmatprep.subr.bf16.mxu1 %v1645_v0 }
 0x26c   :  { %568 = vmatpush1.bf16.msra.mxu0 %v1733_v7  ;;  %1319 = vmatpush3.bf16.msra.mxu1 %v1754_v14 }
 0x26d   :  { %569 = vmatprep.subr.bf16.mxu0 %v1736_v8  ;;  %1320 = vmatprep.subr.bf16.mxu1 %v1645_v0 }
 0x270   :  { %570 = vmatpush1.bf16.msra.mxu0 %v1741_v10  ;;  %1321 = vmatpush3.bf16.msra.mxu1 %v1764_v17 }
 0x271   :  { %571 = vmatprep.subr.bf16.mxu0 %v1745_v11  ;;  %1322 = vmatprep.subr.bf16.mxu1 %v1645_v0 }
 0x274   :  { %572 = vmatpush1.bf16.msra.mxu0 %v1750_v13  ;;  %1323 = vmatpush3.bf16.msra.mxu1 %v1774_v20 }
 0x275   :  { %573 = vmatprep.subr.bf16.mxu0 %v1757_v15  ;;  %1324 = vmatprep.subr.bf16.mxu1 %v1645_v0 }
 0x278   :  { %574 = vmatpush1.bf16.msra.mxu0 %v1761_v16  ;;  %1325 = vmatpush3.bf16.msra.mxu1 %v1784_v23 }
 0x279   :  { %575 = vmatprep.subr.bf16.mxu0 %v1767_v18  ;;  %1326 = vmatprep.subr.bf16.mxu1 %v1645_v0 }
 0x27c   :  { %576 = vmatpush1.bf16.msra.mxu0 %v1771_v19  ;;  %1327 = vmatpush3.bf16.msra.mxu1 %v1790_v24 }
 0x27d   :  { %577 = vmatprep.subr.bf16.mxu0 %v1777_v21  ;;  %1328 = vmatprep.subr.bf16.mxu1 %v1645_v0 }
 0x280   :  { %578 = vmatpush1.bf16.msra.mxu0 %v1781_v22  ;;  %1329 = vmatpush3.bf16.msra.mxu1 %v1795_v26 }
 0x281   :  { %675 = vmatprep.subr.bf16.mxu0 %v1719_v2  ;;  %1334 = vmatprep.subr.bf16.mxu1 %v1645_v0 }
 0x336   :  { %v485_v56 = vpop.f32.mrb[8].mxu0  ;;  %v526_v57 = vpop.f32.mrb[8].mxu1 }
 0x337   :  { %v538_v59 = vadd.f32 %v535_v55, %v485_v56  ;;  %v487_v60 = vpop.f32.mrb[9].mxu0  ;;  %v1312_v61 = vpop.f32.mrb[9].mxu1  ;;  %v552_v37 = vadd.f32 %v1835_v45, %v526_v57 }
 0x338   :  { %v489_v62 = vpop.f32.mrb[10].mxu0  ;;  %v529_v63 = vpop.f32.mrb[10].mxu1  ;;  %v545_v29 = vadd.f32 %v536_v58, %v487_v60 }
 0x339   :  { %v1170_v25 = vmul.f32 -1.442695, %v538_v59  ;;  %v490_v27 = vpop.f32.mrb[11].mxu0  ;;  %v1313_v28 = vpop.f32.mrb[11].mxu1 }
 0x33a   :  { %v1171_v30 = vmul.f32 -1.442695, %v545_v29 }
 0x33b   :  { %1478 = vpow2.f32 %v1170_v25 }
 0x33c   :  { %1480 = vpow2.f32 %v1171_v30  ;;  %v649_v30 = vunpack.c.h.bf16 %v1924_v34 }
 0x345   :  { %v1479_v31 = vpop.eup %1478 }
 0x346   :  { %v542_v32 = vadd.f32 1.0, %v1479_v31  ;;  %v1481_v33 = vpop.eup %1480 }
 0x347   :  { %v549_v35 = vadd.f32 1.0, %v1481_v33 }
 0x348   :  { %1482 = vrcp.f32 %v542_v32 }
 0x349   :  { %1484 = vrcp.f32 %v549_v35 }
 0x352   :  { %v1483_v38 = vpop.eup %1482 }
 0x353   :  { %v553_v39 = vmul.f32 %v1483_v38, %v552_v37  ;;  %v1485_v41 = vpop.eup %1484 }
 0x354   :  { %v556_v42 = vsub.f32 1.0, %v1485_v41  ;;  %v558_v47 = vmul.f32 %v1485_v41, %v1884_v53 }
 0x355   :  { %v554_v40 = vadd.f32 %v553_v39, %v537_v36 }
 0x357   :  { %1486 = vtanh.f32 %v554_v40 }
 0x361   :  { %v1487_v43 = vpop.eup %1486 }
 0x362   :  { %v557_v44 = vmul.f32 %v1487_v43, %v556_v42  ;;  %v757_v42 = vld [vmem:[#allocation3 + $0x30] sm:$0xff] }
 0x363   :  { %v759_v43 = vunpack.c.l.bf16 %v757_v42 }
 0x364   :  { %v1929_v48 = vadd.f32 %v558_v47, %v557_v44 }
 0x366   :  { %561 = vst [vmem:[#allocation9 + $0x10] sm:$0xff] %v1929_v48  ;;  %v562_v49 = vpack.c.bf16 %v1929_v48, %v1929_v48 }
 0x368   :  { %596 = vmatmul.mubr.bf16.vlgmr.msra.gmra.mrb[12].mxu0 %v562_v49  ;;  %1331 = vmatmul.mubr.bf16.vlgmr.msra.gmra.mrb[12].mxu1 %v562_v49 }
 0x369   :  { %676 = vmatpush1.bf16.msra.mxu0 %v1721_v3  ;;  %1335 = vmatpush3.bf16.msra.mxu1 %v1738_v9 }
 0x36a   :  { %677 = vmatprep.subr.bf16.mxu0 %v1724_v4  ;;  %1336 = vmatprep.subr.bf16.mxu1 %v1645_v0 }
 0x36b   :  { %707 = vmatprep.mubr.bf16.mxu0 %v1646_v1  ;;  %1350 = vmatprep.mubr.msk.bf16.mxu1 %vm1647_vm0, %v1645_v0 }
 0x36d   :  { %678 = vmatpush1.bf16.msra.mxu0 %v1727_v5  ;;  %1337 = vmatpush3.bf16.msra.mxu1 %v1748_v12 }
 0x36e   :  { %679 = vmatprep.subr.bf16.mxu0 %v1730_v6  ;;  %1338 = vmatprep.subr.bf16.mxu1 %v1645_v0 }
 0x371   :  { %680 = vmatpush1.bf16.msra.mxu0 %v1733_v7  ;;  %1339 = vmatpush3.bf16.msra.mxu1 %v1754_v14 }
 0x372   :  { %681 = vmatprep.subr.bf16.mxu0 %v1736_v8  ;;  %1340 = vmatprep.subr.bf16.mxu1 %v1645_v0 }
 0x375   :  { %682 = vmatpush1.bf16.msra.mxu0 %v1741_v10  ;;  %1341 = vmatpush3.bf16.msra.mxu1 %v1764_v17 }
 0x376   :  { %683 = vmatprep.subr.bf16.mxu0 %v1745_v11  ;;  %1342 = vmatprep.subr.bf16.mxu1 %v1645_v0 }
 0x379   :  { %684 = vmatpush1.bf16.msra.mxu0 %v1750_v13  ;;  %1343 = vmatpush3.bf16.msra.mxu1 %v1774_v20 }
 0x37a   :  { %685 = vmatprep.subr.bf16.mxu0 %v1757_v15  ;;  %1344 = vmatprep.subr.bf16.mxu1 %v1645_v0 }
 0x37d   :  { %686 = vmatpush1.bf16.msra.mxu0 %v1761_v16  ;;  %1345 = vmatpush3.bf16.msra.mxu1 %v1784_v23 }
 0x37e   :  { %687 = vmatprep.subr.bf16.mxu0 %v1767_v18  ;;  %1346 = vmatprep.subr.bf16.mxu1 %v1645_v0 }
 0x381   :  { %688 = vmatpush1.bf16.msra.mxu0 %v1771_v19  ;;  %1347 = vmatpush3.bf16.msra.mxu1 %v1790_v24 }
 0x382   :  { %689 = vmatprep.subr.bf16.mxu0 %v1777_v21  ;;  %1348 = vmatprep.subr.bf16.mxu1 %v1645_v0 }
 0x385   :  { %690 = vmatpush1.bf16.msra.mxu0 %v1781_v22  ;;  %1349 = vmatpush3.bf16.msra.mxu1 %v1795_v26 }
 0x386   :  { %787 = vmatprep.subr.bf16.mxu0 %v1719_v2  ;;  %1354 = vmatprep.subr.bf16.mxu1 %v1645_v0 }
 0x43b   :  { %v597_v52 = vpop.f32.mrb[12].mxu0  ;;  %v638_v53 = vpop.f32.mrb[12].mxu1 }
 0x43c   :  { %v650_v54 = vadd.f32 %v647_v51, %v597_v52  ;;  %v599_v55 = vpop.f32.mrb[13].mxu0  ;;  %v1332_v56 = vpop.f32.mrb[13].mxu1  ;;  %v664_v31 = vadd.f32 %v1835_v45, %v638_v53 }
 0x43d   :  { %v601_v57 = vpop.f32.mrb[14].mxu0  ;;  %v641_v58 = vpop.f32.mrb[14].mxu1  ;;  %v657_v62 = vadd.f32 %v648_v46, %v599_v55 }
 0x43e   :  { %v1172_v59 = vmul.f32 -1.442695, %v650_v54  ;;  %v602_v60 = vpop.f32.mrb[15].mxu0  ;;  %v1333_v61 = vpop.f32.mrb[15].mxu1 }
 0x43f   :  { %v1173_v63 = vmul.f32 -1.442695, %v657_v62  ;;  %v2012_v61 = vld [vmem:[#allocation3 + $0x38] ss:$12 sps:$4 sm:$0xff]  }
 0x440   :  { %1488 = vpow2.f32 %v1172_v59 }
 0x441   :  { %1490 = vpow2.f32 %v1173_v63  ;;  %v761_v63 = vunpack.c.l.bf16 %v2012_v61 }
 0x44a   :  { %v1489_v25 = vpop.eup %1488 }
 0x44b   :  { %v654_v27 = vadd.f32 1.0, %v1489_v25  ;;  %v1491_v28 = vpop.eup %1490 }
 0x44c   :  { %v661_v29 = vadd.f32 1.0, %v1491_v28 }
 0x44d   :  { %1492 = vrcp.f32 %v654_v27 }
 0x44e   :  { %1494 = vrcp.f32 %v661_v29 }
 0x457   :  { %v1493_v32 = vpop.eup %1492 }
 0x458   :  { %v665_v33 = vmul.f32 %v1493_v32, %v664_v31  ;;  %v1495_v36 = vpop.eup %1494 }
 0x459   :  { %v668_v37 = vsub.f32 1.0, %v1495_v36  ;;  %v670_v40 = vmul.f32 %v1495_v36, %v1929_v48  ;;  %v760_v48 = vunpack.c.h.bf16 %v757_v42 }
 0x45a   :  { %v666_v35 = vadd.f32 %v665_v33, %v649_v30 }
 0x45c   :  { %1496 = vtanh.f32 %v666_v35 }
 0x466   :  { %v1497_v38 = vpop.eup %1496 }
 0x467   :  { %v669_v39 = vmul.f32 %v1497_v38, %v668_v37 }
 0x469   :  { %v1972_v41 = vadd.f32 %v670_v40, %v669_v39 }
 0x46b   :  { %673 = vst [vmem:[#allocation9 + $0x18] sm:$0xff] %v1972_v41  ;;  %v674_v34 = vpack.c.bf16 %v1972_v41, %v1972_v41 }
 0x46d   :  { %708 = vmatmul.mubr.bf16.vlgmr.msra.gmra.mrb[16].mxu0 %v674_v34  ;;  %1351 = vmatmul.mubr.bf16.vlgmr.msra.gmra.mrb[16].mxu1 %v674_v34 }
 0x46e   :  { %788 = vmatpush1.bf16.msra.mxu0 %v1721_v3  ;;  %1355 = vmatpush3.bf16.msra.mxu1 %v1738_v9 }
 0x46f   :  { %789 = vmatprep.subr.bf16.mxu0 %v1724_v4  ;;  %1356 = vmatprep.subr.bf16.mxu1 %v1645_v0 }
 0x470   :  { %819 = vmatprep.mubr.bf16.mxu0 %v1646_v1  ;;  %1370 = vmatprep.mubr.msk.bf16.mxu1 %vm1647_vm0, %v1645_v0 }
 0x472   :  { %790 = vmatpush1.bf16.msra.mxu0 %v1727_v5  ;;  %1357 = vmatpush3.bf16.msra.mxu1 %v1748_v12 }
 0x473   :  { %791 = vmatprep.subr.bf16.mxu0 %v1730_v6  ;;  %1358 = vmatprep.subr.bf16.mxu1 %v1645_v0 }
 0x476   :  { %792 = vmatpush1.bf16.msra.mxu0 %v1733_v7  ;;  %1359 = vmatpush3.bf16.msra.mxu1 %v1754_v14 }
 0x477   :  { %793 = vmatprep.subr.bf16.mxu0 %v1736_v8  ;;  %1360 = vmatprep.subr.bf16.mxu1 %v1645_v0 }
 0x47a   :  { %794 = vmatpush1.bf16.msra.mxu0 %v1741_v10  ;;  %1361 = vmatpush3.bf16.msra.mxu1 %v1764_v17 }
 0x47b   :  { %795 = vmatprep.subr.bf16.mxu0 %v1745_v11  ;;  %1362 = vmatprep.subr.bf16.mxu1 %v1645_v0 }
 0x47e   :  { %796 = vmatpush1.bf16.msra.mxu0 %v1750_v13  ;;  %1363 = vmatpush3.bf16.msra.mxu1 %v1774_v20 }
 0x47f   :  { %797 = vmatprep.subr.bf16.mxu0 %v1757_v15  ;;  %1364 = vmatprep.subr.bf16.mxu1 %v1645_v0 }
 0x482   :  { %798 = vmatpush1.bf16.msra.mxu0 %v1761_v16  ;;  %1365 = vmatpush3.bf16.msra.mxu1 %v1784_v23 }
 0x483   :  { %799 = vmatprep.subr.bf16.mxu0 %v1767_v18  ;;  %1366 = vmatprep.subr.bf16.mxu1 %v1645_v0 }
 0x486   :  { %800 = vmatpush1.bf16.msra.mxu0 %v1771_v19  ;;  %1367 = vmatpush3.bf16.msra.mxu1 %v1790_v24 }
 0x487   :  { %801 = vmatprep.subr.bf16.mxu0 %v1777_v21  ;;  %1368 = vmatprep.subr.bf16.mxu1 %v1645_v0 }
 0x48a   :  { %802 = vmatpush1.bf16.msra.mxu0 %v1781_v22  ;;  %1369 = vmatpush3.bf16.msra.mxu1 %v1795_v26 }
 0x48b   :  { %899 = vmatprep.subr.bf16.mxu0 %v1719_v2  ;;  %1374 = vmatprep.subr.bf16.mxu1 %v1645_v0 }
 0x540   :  { %v709_v44 = vpop.f32.mrb[16].mxu0  ;;  %v750_v47 = vpop.f32.mrb[16].mxu1 }
 0x541   :  { %v762_v49 = vadd.f32 %v759_v43, %v709_v44  ;;  %v711_v50 = vpop.f32.mrb[17].mxu0  ;;  %v1352_v51 = vpop.f32.mrb[17].mxu1  ;;  %v776_v25 = vadd.f32 %v1835_v45, %v750_v47 }
 0x542   :  { %v713_v52 = vpop.f32.mrb[18].mxu0  ;;  %v753_v53 = vpop.f32.mrb[18].mxu1  ;;  %v769_v56 = vadd.f32 %v760_v48, %v711_v50 }
 0x543   :  { %v1174_v46 = vmul.f32 -1.442695, %v762_v49  ;;  %v714_v54 = vpop.f32.mrb[19].mxu0  ;;  %v1353_v55 = vpop.f32.mrb[19].mxu1  ;;  %v873_v49 = vunpack.c.h.bf16 %v2012_v61  ;;  %v1539_v61 = vld [vmem:[#allocation6 + $0x1c] ss:$12 sps:$4 sm:$0xff]  }
 0x544   :  { %v1175_v57 = vmul.f32 -1.442695, %v769_v56 }
 0x545   :  { %1498 = vpow2.f32 %v1174_v46 }
 0x546   :  { %1500 = vpow2.f32 %v1175_v57 }
 0x54f   :  { %v1499_v58 = vpop.eup %1498 }
 0x550   :  { %v766_v59 = vadd.f32 1.0, %v1499_v58  ;;  %v1501_v60 = vpop.eup %1500 }
 0x551   :  { %v773_v62 = vadd.f32 1.0, %v1501_v60  ;;  %v1538_v60 = vld [vmem:[#allocation6] ss:$12 sps:$4 sm:$0xff]  }
 0x552   :  { %1502 = vrcp.f32 %v766_v59 }
 0x553   :  { %1504 = vrcp.f32 %v773_v62  ;;  %v1540_v62 = vld [vmem:[#allocation6 + $0x18] ss:$12 sps:$4 sm:$0xff]  }
 0x55c   :  { %v1503_v27 = vpop.eup %1502 }
 0x55d   :  { %v777_v28 = vmul.f32 %v1503_v27, %v776_v25  ;;  %v1505_v30 = vpop.eup %1504  ;;  %v1542_v25 = vld [vmem:[#allocation6 + $0x30] ss:$12 sps:$4 sm:$0xff]  }
 0x55e   :  { %v780_v31 = vsub.f32 1.0, %v1505_v30  ;;  %v782_v35 = vmul.f32 %v1505_v30, %v1972_v41  ;;  %v1545_v27 = vld [vmem:[#allocation6 + $0x64] ss:$12 sps:$4 sm:$0xff]  }
 0x55f   :  { %v778_v29 = vadd.f32 %v777_v28, %v761_v63  ;;  %v1541_v63 = vld [vmem:[#allocation6 + $0x34] ss:$12 sps:$4 sm:$0xff]  }
 0x561   :  { %1506 = vtanh.f32 %v778_v29 }
 0x56b   :  { %v1507_v32 = vpop.eup %1506 }
 0x56c   :  { %v781_v33 = vmul.f32 %v1507_v32, %v780_v31  ;;  %v982_v31 = vld [vmem:[#allocation3 + $0x50] ss:$12 sps:$4 sm:$0xff]  }
 0x56e   :  { %v2017_v36 = vadd.f32 %v782_v35, %v781_v33  ;;  %v985_v33 = vunpack.c.l.bf16 %v982_v31 }
 0x570   :  { %785 = vst [vmem:[#allocation9 + $0x20] sm:$0xff] %v2017_v36  ;;  %v786_v37 = vpack.c.bf16 %v2017_v36, %v2017_v36 }
 0x572   :  { %820 = vmatmul.mubr.bf16.vlgmr.msra.gmra.mrb[20].mxu0 %v786_v37  ;;  %1371 = vmatmul.mubr.bf16.vlgmr.msra.gmra.mrb[20].mxu1 %v786_v37 }
 0x573   :  { %900 = vmatpush1.bf16.msra.mxu0 %v1721_v3  ;;  %1375 = vmatpush3.bf16.msra.mxu1 %v1738_v9  ;;  %v869_v3 = vld [vmem:[#allocation3 + $0x3c] sm:$0xff] }
 0x574   :  { %901 = vmatprep.subr.bf16.mxu0 %v1724_v4  ;;  %1376 = vmatprep.subr.bf16.mxu1 %v1645_v0  ;;  %v871_v4 = vunpack.c.l.bf16 %v869_v3 }
 0x575   :  { %931 = vmatprep.mubr.bf16.mxu0 %v1646_v1  ;;  %1390 = vmatprep.mubr.msk.bf16.mxu1 %vm1647_vm0, %v1645_v0 }
 0x577   :  { %902 = vmatpush1.bf16.msra.mxu0 %v1727_v5  ;;  %1377 = vmatpush3.bf16.msra.mxu1 %v1748_v12 }
 0x578   :  { %903 = vmatprep.subr.bf16.mxu0 %v1730_v6  ;;  %1378 = vmatprep.subr.bf16.mxu1 %v1645_v0 }
 0x57b   :  { %904 = vmatpush1.bf16.msra.mxu0 %v1733_v7  ;;  %1379 = vmatpush3.bf16.msra.mxu1 %v1754_v14  ;;  %v872_v7 = vunpack.c.h.bf16 %v869_v3 }
 0x57c   :  { %905 = vmatprep.subr.bf16.mxu0 %v1736_v8  ;;  %1380 = vmatprep.subr.bf16.mxu1 %v1645_v0 }
 0x57f   :  { %906 = vmatpush1.bf16.msra.mxu0 %v1741_v10  ;;  %1381 = vmatpush3.bf16.msra.mxu1 %v1764_v17 }
 0x580   :  { %907 = vmatprep.subr.bf16.mxu0 %v1745_v11  ;;  %1382 = vmatprep.subr.bf16.mxu1 %v1645_v0 }
 0x583   :  { %908 = vmatpush1.bf16.msra.mxu0 %v1750_v13  ;;  %1383 = vmatpush3.bf16.msra.mxu1 %v1774_v20 }
 0x584   :  { %909 = vmatprep.subr.bf16.mxu0 %v1757_v15  ;;  %1384 = vmatprep.subr.bf16.mxu1 %v1645_v0 }
 0x587   :  { %910 = vmatpush1.bf16.msra.mxu0 %v1761_v16  ;;  %1385 = vmatpush3.bf16.msra.mxu1 %v1784_v23 }
 0x588   :  { %911 = vmatprep.subr.bf16.mxu0 %v1767_v18  ;;  %1386 = vmatprep.subr.bf16.mxu1 %v1645_v0 }
 0x58b   :  { %912 = vmatpush1.bf16.msra.mxu0 %v1771_v19  ;;  %1387 = vmatpush3.bf16.msra.mxu1 %v1790_v24 }
 0x58c   :  { %913 = vmatprep.subr.bf16.mxu0 %v1777_v21  ;;  %1388 = vmatprep.subr.bf16.mxu1 %v1645_v0 }
 0x58f   :  { %914 = vmatpush1.bf16.msra.mxu0 %v1781_v22  ;;  %1389 = vmatpush3.bf16.msra.mxu1 %v1795_v26 }
 0x590   :  { %1011 = vmatprep.subr.bf16.mxu0 %v1719_v2  ;;  %1394 = vmatprep.subr.bf16.mxu1 %v1645_v0 }
 0x645   :  { %v821_v5 = vpop.f32.mrb[20].mxu0  ;;  %v862_v6 = vpop.f32.mrb[20].mxu1 }
 0x646   :  { %v874_v8 = vadd.f32 %v871_v4, %v821_v5  ;;  %v823_v10 = vpop.f32.mrb[21].mxu0  ;;  %v1372_v11 = vpop.f32.mrb[21].mxu1  ;;  %v888_v50 = vadd.f32 %v1835_v45, %v862_v6 }
 0x647   :  { %v825_v38 = vpop.f32.mrb[22].mxu0  ;;  %v865_v39 = vpop.f32.mrb[22].mxu1  ;;  %v881_v42 = vadd.f32 %v872_v7, %v823_v10 }
 0x648   :  { %v1176_v40 = vmul.f32 -1.442695, %v874_v8  ;;  %v826_v41 = vpop.f32.mrb[23].mxu0  ;;  %v1373_v34 = vpop.f32.mrb[23].mxu1  ;;  %v1093_v38 = vld [vmem:[#allocation3 + $0x54] sm:$0xff] }
 0x649   :  { %v1177_v43 = vmul.f32 -1.442695, %v881_v42  ;;  %v1095_v39 = vunpack.c.l.bf16 %v1093_v38  ;;  %v1096_v34 = vunpack.c.h.bf16 %v1093_v38 }
 0x64a   :  { %1508 = vpow2.f32 %v1176_v40 }
 0x64b   :  { %1510 = vpow2.f32 %v1177_v43 }
 0x654   :  { %v1509_v2 = vpop.eup %1508 }
 0x655   :  { %v878_v44 = vadd.f32 1.0, %v1509_v2  ;;  %v1511_v47 = vpop.eup %1510 }
 0x656   :  { %v885_v48 = vadd.f32 1.0, %v1511_v47 }
 0x657   :  { %1512 = vrcp.f32 %v878_v44 }
 0x658   :  { %1514 = vrcp.f32 %v885_v48 }
 0x661   :  { %v1513_v51 = vpop.eup %1512 }
 0x662   :  { %v889_v52 = vmul.f32 %v1513_v51, %v888_v50  ;;  %v1515_v46 = vpop.eup %1514 }
 0x663   :  { %v892_v54 = vsub.f32 1.0, %v1515_v46  ;;  %v894_v57 = vmul.f32 %v1515_v46, %v2017_v36 }
 0x664   :  { %v890_v53 = vadd.f32 %v889_v52, %v873_v49 }
 0x666   :  { %1516 = vtanh.f32 %v890_v53 }
 0x670   :  { %v1517_v55 = vpop.eup %1516 }
 0x671   :  { %v893_v56 = vmul.f32 %v1517_v55, %v892_v54 }
 0x673   :  { %v2060_v58 = vadd.f32 %v894_v57, %v893_v56  ;;  %v1097_v56 = vunpack.c.h.bf16 %v982_v31 }
 0x675   :  { %897 = vst [vmem:[#allocation9 + $0x28] sm:$0xff] %v2060_v58  ;;  %v898_v59 = vpack.c.bf16 %v2060_v58, %v2060_v58 }
 0x677   :  { %932 = vmatmul.mubr.bf16.vlgmr.msra.gmra.mrb[24].mxu0 %v898_v59  ;;  %1391 = vmatmul.mubr.bf16.vlgmr.msra.gmra.mrb[24].mxu1 %v898_v59 }
 0x678   :  { %1012 = vmatpush1.bf16.msra.mxu0 %v1538_v60  ;;  %1395 = vmatpush3.bf16.msra.mxu1 %v1738_v9  ;;  %v1543_v9 = vld [vmem:[#allocation6 + $0x4c] ss:$12 sps:$4 sm:$0xff]  }
 0x679   :  { %1013 = vmatprep.subr.bf16.mxu0 %v1539_v61  ;;  %1396 = vmatprep.subr.bf16.mxu1 %v1645_v0 }
 0x67a   :  { %1043 = vmatprep.mubr.bf16.mxu0 %v1646_v1  ;;  %1410 = vmatprep.mubr.msk.bf16.mxu1 %vm1647_vm0, %v1645_v0  ;;  %v1544_v1 = vld [vmem:[#allocation6 + $0x48] ss:$12 sps:$4 sm:$0xff]  }
 0x67c   :  { %1014 = vmatpush1.bf16.msra.mxu0 %v1540_v62  ;;  %1397 = vmatpush3.bf16.msra.mxu1 %v1748_v12  ;;  %v981_v12 = vld [vmem:[#allocation3 + $0x48] sm:$0xff] }
 0x67d   :  { %1015 = vmatprep.subr.bf16.mxu0 %v1541_v63  ;;  %1398 = vmatprep.subr.bf16.mxu1 %v1645_v0 }
 0x680   :  { %1016 = vmatpush1.bf16.msra.mxu0 %v1542_v25  ;;  %1399 = vmatpush3.bf16.msra.mxu1 %v1754_v14 }
 0x681   :  { %1017 = vmatprep.subr.bf16.mxu0 %v1543_v9  ;;  %1400 = vmatprep.subr.bf16.mxu1 %v1645_v0 }
 0x684   :  { %1018 = vmatpush1.bf16.msra.mxu0 %v1544_v1  ;;  %1401 = vmatpush3.bf16.msra.mxu1 %v1764_v17 }
 0x685   :  { %1019 = vmatprep.subr.bf16.mxu0 %v1545_v27  ;;  %1402 = vmatprep.subr.bf16.mxu1 %v1645_v0 }
 0x688   :  { %1020 = vmatpush1.bf16.msra.mxu0 %v1750_v13  ;;  %1403 = vmatpush3.bf16.msra.mxu1 %v1774_v20  ;;  %v983_v13 = vunpack.c.l.bf16 %v981_v12 }
 0x689   :  { %1021 = vmatprep.subr.bf16.mxu0 %v1757_v15  ;;  %1404 = vmatprep.subr.bf16.mxu1 %v1645_v0 }
 0x68c   :  { %1022 = vmatpush1.bf16.msra.mxu0 %v1761_v16  ;;  %1405 = vmatpush3.bf16.msra.mxu1 %v1784_v23  ;;  %v984_v16 = vunpack.c.h.bf16 %v981_v12 }
 0x68d   :  { %1023 = vmatprep.subr.bf16.mxu0 %v1767_v18  ;;  %1406 = vmatprep.subr.bf16.mxu1 %v1645_v0 }
 0x690   :  { %1024 = vmatpush1.bf16.msra.mxu0 %v1771_v19  ;;  %1407 = vmatpush3.bf16.msra.mxu1 %v1790_v24 }
 0x691   :  { %1025 = vmatprep.subr.bf16.mxu0 %v1777_v21  ;;  %1408 = vmatprep.subr.bf16.mxu1 %v1645_v0 }
 0x694   :  { %1026 = vmatpush1.bf16.msra.mxu0 %v1781_v22  ;;  %1409 = vmatpush3.bf16.msra.mxu1 %v1795_v26 }
 0x74a   :  { %v933_v14 = vpop.f32.mrb[24].mxu0  ;;  %v974_v15 = vpop.f32.mrb[24].mxu1 }
 0x74b   :  { %v986_v17 = vadd.f32 %v983_v13, %v933_v14  ;;  %v935_v18 = vpop.f32.mrb[25].mxu0  ;;  %v1392_v20 = vpop.f32.mrb[25].mxu1  ;;  %v1000_v35 = vadd.f32 %v1835_v45, %v974_v15 }
 0x74c   :  { %v937_v23 = vpop.f32.mrb[26].mxu0  ;;  %v977_v19 = vpop.f32.mrb[26].mxu1  ;;  %v993_v21 = vadd.f32 %v984_v16, %v935_v18 }
 0x74d   :  { %v1178_v28 = vmul.f32 -1.442695, %v986_v17  ;;  %v938_v24 = vpop.f32.mrb[27].mxu0  ;;  %v1393_v29 = vpop.f32.mrb[27].mxu1 }
 0x74e   :  { %v1179_v0 = vmul.f32 -1.442695, %v993_v21 }
 0x74f   :  { %1518 = vpow2.f32 %v1178_v28 }
 0x750   :  { %1520 = vpow2.f32 %v1179_v0 }
 0x759   :  { %v1519_v22 = vpop.eup %1518 }
 0x75a   :  { %v990_v30 = vadd.f32 1.0, %v1519_v22  ;;  %v1521_v26 = vpop.eup %1520 }
 0x75b   :  { %v997_v32 = vadd.f32 1.0, %v1521_v26 }
 0x75c   :  { %1522 = vrcp.f32 %v990_v30 }
 0x75d   :  { %1524 = vrcp.f32 %v997_v32 }
 0x766   :  { %v1523_v36 = vpop.eup %1522 }
 0x767   :  { %v1001_v37 = vmul.f32 %v1523_v36, %v1000_v35  ;;  %v1525_v4 = vpop.eup %1524 }
 0x768   :  { %v1004_v5 = vsub.f32 1.0, %v1525_v4  ;;  %v1006_v8 = vmul.f32 %v1525_v4, %v2060_v58 }
 0x769   :  { %v1002_v3 = vadd.f32 %v1001_v37, %v985_v33 }
 0x76b   :  { %1526 = vtanh.f32 %v1002_v3 }
 0x775   :  { %v1527_v6 = vpop.eup %1526 }
 0x776   :  { %v1005_v7 = vmul.f32 %v1527_v6, %v1004_v5 }
 0x778   :  { %v1007_v10 = vadd.f32 %v1006_v8, %v1005_v7 }
 0x77a   :  { %1009 = vst [vmem:[#allocation9 + $0x30] sm:$0xff] %v1007_v10  ;;  %v1010_v11 = vpack.c.bf16 %v1007_v10, %v1007_v10 }
 0x77c   :  { %1044 = vmatmul.mubr.bf16.vlgmr.msra.gmra.mrb[28].mxu0 %v1010_v11  ;;  %1411 = vmatmul.mubr.bf16.vlgmr.msra.gmra.mrb[28].mxu1 %v1010_v11 }
 0x84f   :  { %v1045_v40 = vpop.f32.mrb[28].mxu0  ;;  %v1086_v41 = vpop.f32.mrb[28].mxu1 }
 0x850   :  { %v1098_v42 = vadd.f32 %v1095_v39, %v1045_v40  ;;  %v1047_v43 = vpop.f32.mrb[29].mxu0  ;;  %v1412_v2 = vpop.f32.mrb[29].mxu1  ;;  %v1112_v57 = vadd.f32 %v1835_v45, %v1086_v41 }
 0x851   :  { %v1049_v44 = vpop.f32.mrb[30].mxu0  ;;  %v1089_v47 = vpop.f32.mrb[30].mxu1  ;;  %v1105_v51 = vadd.f32 %v1096_v34, %v1047_v43 }
 0x852   :  { %v1180_v48 = vmul.f32 -1.442695, %v1098_v42  ;;  %v1050_v49 = vpop.f32.mrb[31].mxu0  ;;  %v1413_v50 = vpop.f32.mrb[31].mxu1 }
 0x853   :  { %v1181_v52 = vmul.f32 -1.442695, %v1105_v51 }
 0x854   :  { %1528 = vpow2.f32 %v1180_v48 }
 0x855   :  { %1530 = vpow2.f32 %v1181_v52 }
 0x85e   :  { %v1529_v53 = vpop.eup %1528 }
 0x85f   :  { %v1102_v46 = vadd.f32 1.0, %v1529_v53  ;;  %v1531_v54 = vpop.eup %1530 }
 0x860   :  { %v1109_v55 = vadd.f32 1.0, %v1531_v54 }
 0x861   :  { %1532 = vrcp.f32 %v1102_v46 }
 0x862   :  { %1534 = vrcp.f32 %v1109_v55 }
 0x86b   :  { %v1533_v58 = vpop.eup %1532 }
 0x86c   :  { %v1113_v59 = vmul.f32 %v1533_v58, %v1112_v57  ;;  %v1535_v61 = vpop.eup %1534 }
 0x86d   :  { %v1116_v62 = vsub.f32 1.0, %v1535_v61  ;;  %v1118_v9 = vmul.f32 %v1535_v61, %v1007_v10 }
 0x86e   :  { %v1114_v60 = vadd.f32 %v1113_v59, %v1097_v56 }
 0x870   :  { %1536 = vtanh.f32 %v1114_v60 }
 0x87a   :  { %v1537_v63 = vpop.eup %1536 }
 0x87b   :  { %v1117_v25 = vmul.f32 %v1537_v63, %v1116_v62 }
 0x87d   :  { %v1119_v1 = vadd.f32 %v1118_v9, %v1117_v25 }
 0x87f   :  { %1121 = vst [vmem:[#allocation9 + $0x38] sm:$0xff] %v1119_v1 }
 0x880   :  { %1623 = shalt.err (!%p1620_p0)
}
 0x881   :  { %s1624_s26 = scalar_lea.hbm %s2108_s3, 1024 }
 0x882   :  { %p1625_p1 = scmp.ne.s32.totalorder %s2108_s3, %s1624_s26  ;;  %p1628_p2 = scmp.lt.u32.totalorder %s1624_s26, %s2108_s3 }
 0x884   :  { %p1630_p3 = pnand %p1628_p2, %p1625_p1 }
 0x886   :  { %1633 = shalt.err (!%p1630_p3)
}
 0x887   :  { %s1650_s4 = smov 128   ;;  %s1651_s5 = smov 8  }
 0x888   :  { %1134 = dma.vmem_to_hbm [thread:$0]  %s1129_s22, 1024, %s2108_s3, [#allocation5], %s1650_s4, %s1650_s4, %s1651_s5  }
 0x889   :  { %1638 = dma.done.wait [#allocation5], 1024  }
 0x88a   :  { %1639 = vsyncadd [#allocation5], 4294966272 }
 0x88b   :  { %1138 = vsyncpa [#allocation4], 1 }
 0x88c   :  { %1139 = vsyncpa [#allocation7], 1 }
 0x88d   :  { %1140 = vsyncpa [#allocation5], 1 }

</bundles_post_ra>
